<compile_context>
chip_gen: v6e
topology: v6e:2x2x1
jax: 0.10.0
libtpu: 0.0.40
codegen_flags: <defaults>
</compile_context>

<pallas_src>
import functools

import jax
import jax.numpy as jnp
from jax.experimental import pallas as pl
from jax.experimental.pallas import tpu as pltpu

NEG_INF = -9e15  # same masking constant as the reference GAT implementation


def _round_up(n, m):
    return (n + m - 1) // m * m


def _pad2d(x, rows=None, cols=None):
    r, c = x.shape
    pr = 0 if rows is None else rows - r
    pc = 0 if cols is None else cols - c
    return jnp.pad(x, ((0, pr), (0, pc)))


def _leaky_relu(x, alpha):
    return jnp.where(x > 0, x, alpha * x)


def fewgat_kernel(x_ref, bias_ref, w1_ref, wtw2_ref, out_ref, *,
                  alpha, hid, hid_pad, num_class):
    f32, bf16 = jnp.float32, jnp.bfloat16
    H, Hp = hid, hid_pad

    x = x_ref[...]                                   # [Np, Fp] bf16

    # ---- GAT layer 1: self.gat(inputs, adj, attention_false, False) ----
    # (use_attention_in=False -> the zeros[100,100] placeholder is unused.)
    # w1_ref cols 0..H-1 = W1, col H = W1@a1_src, col H+1 = W1@a1_dst, rest 0.
    wh = jnp.dot(x, w1_ref[...], preferred_element_type=f32)        # [Np, Hp]
    wh_bf = wh.astype(bf16)
    ad_src = wh[:, H:H + 1]                          # [Np, 1] = Wh @ a1_src
    ad_dst = wh[:, H + 1:H + 2]                      # [Np, 1] = Wh @ a1_dst
    # additive mask read per-softmax (bf16 in VMEM, fused upcast, short live range)
    e = _leaky_relu(ad_src + ad_dst.T, alpha) + bias_ref[...].astype(f32)
    m1 = jnp.max(e, axis=1, keepdims=True)
    p1 = jnp.exp(e - m1)                             # unnormalized weights
    denom1 = jnp.sum(p1, axis=1, keepdims=True)
    # F.dropout(attention) is the identity in eval mode.
    h_agg = jnp.dot(p1.astype(bf16), wh_bf, preferred_element_type=f32)
    h_prime = h_agg * pl.reciprocal(denom1, approx=True)            # [Np, Hp]
    # ELU (concat=True); exp argument clamped so the discarded branch can't overflow.
    res = jnp.where(h_prime > 0, h_prime,
                    jnp.exp(jnp.minimum(h_prime, 0.0)) - 1.0)
    res_bf = res.astype(bf16)

    # ---- tree layer + output-GAT projection in a single 256-wide MXU pass ----
    # TODO(synk): RecursiverLayer / self.outgat sources are not provided in the
    # module; modelled as a second masked attention head whose weights feed the
    # hidden_dim -> num_class output aggregation (concat=False).
    big = jnp.dot(res_bf, wtw2_ref[...], preferred_element_type=f32)  # [Np, Hp+Cp]
    td_src = big[:, H:H + 1]                         # Wh_t @ at_src
    td_dst = big[:, H + 1:H + 2]                     # Wh_t @ at_dst
    te = _leaky_relu(td_src + td_dst.T, alpha) + bias_ref[...].astype(f32)
    m2 = jnp.max(te, axis=1, keepdims=True)
    p2 = jnp.exp(te - m2)
    denom2 = jnp.sum(p2, axis=1, keepdims=True)
    wh2 = big[:, Hp:]                                # [Np, Cp], 128-aligned slice
    logits = jnp.dot(p2.astype(bf16), wh2.astype(bf16),
                     preferred_element_type=f32) * pl.reciprocal(denom2, approx=True)

    # ---- F.log_softmax(all_res2, dim=1), over the real class columns only ----
    col = jax.lax.broadcasted_iota(jnp.int32, logits.shape, 1)
    logits = jnp.where(col < num_class, logits, NEG_INF)
    m = jnp.max(logits, axis=1, keepdims=True)
    s = logits - m
    lse = jnp.log(jnp.sum(jnp.exp(s), axis=1, keepdims=True))
    out_ref[...] = s - lse   # lane-dense [Np, Cp] slab; wrapper slices [:N, :C]


def few_gat_forward(x, adj, params, alpha=0.2):
    N, F = x.shape
    H = params["w1"].shape[1]
    C = params["w2"].shape[1]
    Np = _round_up(N, 128)
    Fp = _round_up(F, 128)
    Hp = _round_up(H + 2, 128)   # +2 spare lanes host the folded attention vectors
    Cp = _round_up(C, 128)
    bf16 = jnp.bfloat16

    x_p = _pad2d(x, rows=Np, cols=Fp).astype(bf16)

    # Additive adjacency mask (0 = edge / NEG_INF = no edge) in bf16 -> halves
    # the [N,N] DMA bytes vs f32.  Padded rows keep ONLY their diagonal as an
    # edge (finite softmax over a zero wh row); padded columns are NEG_INF for
    # real rows so they never contribute.
    bias = jnp.full((Np, Np), NEG_INF, jnp.float32)
    bias = bias.at[:N, :N].set(jnp.where(adj > 0, 0.0, NEG_INF))
    if Np > N:
        pad_idx = jnp.arange(N, Np)
        bias = bias.at[pad_idx, pad_idx].set(0.0)
    bias = bias.astype(bf16)

    # Fold the width-1 attention vectors into the padded weight columns:
    # col H of w1_p = W1 @ a1_src, col H+1 = W1 @ a1_dst  (same for Wt / at_*),
    # so a single MXU pass yields Wh plus both per-node scores.  The extra
    # columns live in lanes that were zero padding anyway; rows H..Hp-1 of the
    # second-layer operand are zero, so the "score" columns of res can never
    # contaminate downstream matmuls.
    w1a = jnp.concatenate(
        [params["w1"],
         params["w1"] @ params["a1_src"],
         params["w1"] @ params["a1_dst"]], axis=1)                  # [F, H+2]
    w1_p = _pad2d(w1a, rows=Fp, cols=Hp).astype(bf16)

    wta = jnp.concatenate(
        [params["wt"],
         params["wt"] @ params["at_src"],
         params["wt"] @ params["at_dst"]], axis=1)                  # [H, H+2]
    wt_p = _pad2d(wta, rows=Hp, cols=Hp)
    w2_p = _pad2d(params["w2"], rows=Hp, cols=Cp)
    wtw2 = jnp.concatenate([wt_p, w2_p], axis=1).astype(bf16)       # [Hp, Hp+Cp]

    # Scheduler / VMEM hints.  Single grid step -> no double-buffer term; cap
    # the limit at the real per-TC VMEM (64 MiB on v7x, 128 MiB on v5e/v6e).
    try:
        vmem_cap = int(getattr(pltpu.get_tpu_info(), "vmem_capacity_bytes",
                               64 << 20))
    except Exception:
        vmem_cap = 64 << 20   # conservative v7x fallback

    in_bytes = 2 * (Np * Fp + Np * Np + Fp * Hp + Hp * (Hp + Cp))
    out_bytes = 4 * Np * Cp
    scratch_f32 = 4 * (3 * Np * Np + 4 * Np * Hp + Np * (Hp + Cp) + 2 * Np * Cp)
    vmem_budget = int(min(in_bytes + out_bytes + scratch_f32 + (8 << 20),
                          vmem_cap * 9 // 10))

    flops = (2 * Np * (Fp * Hp + Np * Hp + Hp * (Hp + Cp) + Np * Cp)
             + 12 * Np * Np)
    transcendentals = 2 * Np * Np + Np * Hp + Np * Cp

    kernel = functools.partial(fewgat_kernel, alpha=alpha, hid=H, hid_pad=Hp,
                               num_class=C)
    vmem_spec = lambda: pl.BlockSpec(memory_space=pltpu.MemorySpace.VMEM)

    out_padded = pl.pallas_call(
        kernel,
        out_shape=jax.ShapeDtypeStruct((Np, Cp), jnp.float32),
        in_specs=[vmem_spec() for _ in range(4)],
        out_specs=vmem_spec(),
        compiler_params=pltpu.CompilerParams(vmem_limit_bytes=vmem_budget),
        cost_estimate=pl.CostEstimate(flops=flops,
                                      transcendentals=transcendentals,
                                      bytes_accessed=in_bytes + out_bytes),
    )(x_p, bias, w1_p, wtw2)
    # TODO(synk): for production graph sizes (N >> ~2k) or batches of graphs,
    # restructure into the row-tiled two-phase flash-style kernel: phase 1
    # writes wh/res into a resident [N,Hp] bf16 VMEM scratch, phase 2 streams
    # [tq>=512, N] bias tiles (pipeline_mode=pl.Buffered(2-3), "parallel" row
    # axis for v7x's two TCs, int8/bit-packed adjacency on v6e/v7x) instead of
    # this single fully-resident invocation.
    return out_padded[:N, :C]


def init_params(key, feat_dim, hidden_dim, num_class):
    ks = jax.random.split(key, 7)

    def xavier(k, shape):
        fan_in, fan_out = shape[0], shape[-1]
        scale = jnp.sqrt(6.0 / (fan_in + fan_out))
        return jax.random.uniform(k, shape, jnp.float32, -scale, scale)

    return {
        "w1":     xavier(ks[0], (feat_dim, hidden_dim)),
        "a1_src": xavier(ks[1], (hidden_dim, 1)),
        "a1_dst": xavier(ks[2], (hidden_dim, 1)),
        "wt":     xavier(ks[3], (hidden_dim, hidden_dim)),
        "at_src": xavier(ks[4], (hidden_dim, 1)),
        "at_dst": xavier(ks[5], (hidden_dim, 1)),
        "w2":     xavier(ks[6], (hidden_dim, num_class)),
    }


if __name__ == "__main__":
    # N=100 matches the PyTorch placeholder size and exercises the row-padding
    # (N -> 128) + padded-row bias handling.
    N, FEAT, HID, NUM_CLASS = 100, 64, 32, 8

    key = jax.random.PRNGKey(0)
    k_x, k_adj, k_p = jax.random.split(key, 3)

    x = jax.random.normal(k_x, (N, FEAT), dtype=jnp.float32)

    # Random symmetric adjacency with self-loops.
    probs = jax.random.uniform(k_adj, (N, N))
    adj = (probs < 0.1).astype(jnp.float32)
    adj = jnp.maximum(adj, adj.T)
    adj = jnp.maximum(adj, jnp.eye(N, dtype=jnp.float32))

    params = init_params(k_p, FEAT, HID, NUM_CLASS)

    out = few_gat_forward(x, adj, params, alpha=0.2)
    out = jax.block_until_ready(out)

    assert out.shape == (N, NUM_CLASS)
    assert bool(jnp.all(jnp.isfinite(out)))
    # rows of log_softmax must exp-sum to 1
    row_sums = jnp.sum(jnp.exp(out), axis=1)
    assert bool(jnp.all(jnp.abs(row_sums - 1.0) < 1e-3))
    print("KERNEL_OK")
</pallas_src>

<mosaic_0001>
module attributes {stable_mosaic.version = 11 : i64} {
  func.func @fewgat_kernel(%arg0: memref<128x128xbf16, #tpu.memory_space<vmem>>, %arg1: memref<128x128xbf16, #tpu.memory_space<vmem>>, %arg2: memref<128x128xbf16, #tpu.memory_space<vmem>>, %arg3: memref<128x256xbf16, #tpu.memory_space<vmem>>, %arg4: memref<128x128xf32, #tpu.memory_space<vmem>>) attributes {dimension_semantics = [], scalar_prefetch = 0 : i64, scratch_operands = 0 : i64, tpu.core_type = #tpu.core_type<tc>} {
    %c0 = arith.constant 0 : index
    %c0_0 = arith.constant 0 : index
    %0 = vector.load %arg0[%c0, %c0_0] : memref<128x128xbf16, #tpu.memory_space<vmem>>, vector<128x128xbf16>
    %c0_1 = arith.constant 0 : index
    %c0_2 = arith.constant 0 : index
    %1 = vector.load %arg2[%c0_1, %c0_2] : memref<128x128xbf16, #tpu.memory_space<vmem>>, vector<128x128xbf16>
    %cst = arith.constant dense<0.000000e+00> : vector<128x128xf32>
    %2 = tpu.matmul %0, %1, %cst {dimension_numbers = #tpu.dot_dimension_numbers<[1], [0], [0], [1], [0, 0, 1, 1], [], []>} : vector<128x128xbf16>, vector<128x128xbf16>, vector<128x128xf32> -> vector<128x128xf32>
    %3 = arith.truncf %2 : vector<128x128xf32> to vector<128x128xbf16>
    %4 = vector.extract_strided_slice %2 {offsets = [0, 32], sizes = [128, 1], strides = [1, 1]} : vector<128x128xf32> to vector<128x1xf32>
    %5 = vector.extract_strided_slice %2 {offsets = [0, 33], sizes = [128, 1], strides = [1, 1]} : vector<128x128xf32> to vector<128x1xf32>
    %6 = tpu.transpose %5, [1, 0] : vector<128x1xf32> -> vector<1x128xf32>
    %7 = vector.broadcast %4 : vector<128x1xf32> to vector<128x128xf32>
    %8 = vector.broadcast %6 : vector<1x128xf32> to vector<128x128xf32>
    %9 = arith.addf %7, %8 : vector<128x128xf32>
    %cst_3 = arith.constant 0.000000e+00 : f32
    %10 = vector.broadcast %cst_3 : f32 to vector<128x128xf32>
    %11 = arith.cmpf ogt, %9, %10 : vector<128x128xf32>
    %cst_4 = arith.constant 2.000000e-01 : f32
    %12 = vector.broadcast %cst_4 : f32 to vector<128x128xf32>
    %13 = arith.mulf %12, %9 : vector<128x128xf32>
    %14 = arith.select %11, %9, %13 : vector<128x128xi1>, vector<128x128xf32>
    %c0_5 = arith.constant 0 : index
    %c0_6 = arith.constant 0 : index
    %15 = vector.load %arg1[%c0_5, %c0_6] : memref<128x128xbf16, #tpu.memory_space<vmem>>, vector<128x128xbf16>
    %16 = arith.extf %15 : vector<128x128xbf16> to vector<128x128xf32>
    %17 = arith.addf %14, %16 : vector<128x128xf32>
    %cst_7 = arith.constant dense<0xFF800000> : vector<128xf32>
    %18 = vector.multi_reduction <maximumf>, %17, %cst_7 [1] : vector<128x128xf32> to vector<128xf32>
    %19 = vector.shape_cast %18 : vector<128xf32> to vector<128x1xf32>
    %20 = vector.broadcast %19 : vector<128x1xf32> to vector<128x128xf32>
    %21 = arith.subf %17, %20 : vector<128x128xf32>
    %22 = math.exp %21 : vector<128x128xf32>
    %cst_8 = arith.constant dense<0.000000e+00> : vector<128xf32>
    %23 = vector.multi_reduction <add>, %22, %cst_8 [1] : vector<128x128xf32> to vector<128xf32>
    %24 = vector.shape_cast %23 : vector<128xf32> to vector<128x1xf32>
    %25 = arith.truncf %22 : vector<128x128xf32> to vector<128x128xbf16>
    %cst_9 = arith.constant dense<0.000000e+00> : vector<128x128xf32>
    %26 = tpu.matmul %25, %3, %cst_9 {dimension_numbers = #tpu.dot_dimension_numbers<[1], [0], [0], [1], [0, 0, 1, 1], [], []>} : vector<128x128xbf16>, vector<128x128xbf16>, vector<128x128xf32> -> vector<128x128xf32>
    %27 = tpu.reciprocal %24 {approx = true} : vector<128x1xf32> -> vector<128x1xf32>
    %28 = vector.broadcast %27 : vector<128x1xf32> to vector<128x128xf32>
    %29 = arith.mulf %26, %28 : vector<128x128xf32>
    %cst_10 = arith.constant 0.000000e+00 : f32
    %30 = vector.broadcast %cst_10 : f32 to vector<128x128xf32>
    %31 = arith.cmpf ogt, %29, %30 : vector<128x128xf32>
    %cst_11 = arith.constant 0.000000e+00 : f32
    %32 = vector.broadcast %cst_11 : f32 to vector<128x128xf32>
    %33 = arith.minimumf %29, %32 : vector<128x128xf32>
    %34 = math.exp %33 : vector<128x128xf32>
    %cst_12 = arith.constant 1.000000e+00 : f32
    %35 = vector.broadcast %cst_12 : f32 to vector<128x128xf32>
    %36 = arith.subf %34, %35 : vector<128x128xf32>
    %37 = arith.select %31, %29, %36 : vector<128x128xi1>, vector<128x128xf32>
    %38 = arith.truncf %37 : vector<128x128xf32> to vector<128x128xbf16>
    %c0_13 = arith.constant 0 : index
    %c0_14 = arith.constant 0 : index
    %39 = vector.load %arg3[%c0_13, %c0_14] : memref<128x256xbf16, #tpu.memory_space<vmem>>, vector<128x256xbf16>
    %cst_15 = arith.constant dense<0.000000e+00> : vector<128x256xf32>
    %40 = tpu.matmul %38, %39, %cst_15 {dimension_numbers = #tpu.dot_dimension_numbers<[1], [0], [0], [1], [0, 0, 1, 1], [], []>} : vector<128x128xbf16>, vector<128x256xbf16>, vector<128x256xf32> -> vector<128x256xf32>
    %41 = vector.extract_strided_slice %40 {offsets = [0, 32], sizes = [128, 1], strides = [1, 1]} : vector<128x256xf32> to vector<128x1xf32>
    %42 = vector.extract_strided_slice %40 {offsets = [0, 33], sizes = [128, 1], strides = [1, 1]} : vector<128x256xf32> to vector<128x1xf32>
    %43 = tpu.transpose %42, [1, 0] : vector<128x1xf32> -> vector<1x128xf32>
    %44 = vector.broadcast %41 : vector<128x1xf32> to vector<128x128xf32>
    %45 = vector.broadcast %43 : vector<1x128xf32> to vector<128x128xf32>
    %46 = arith.addf %44, %45 : vector<128x128xf32>
    %cst_16 = arith.constant 0.000000e+00 : f32
    %47 = vector.broadcast %cst_16 : f32 to vector<128x128xf32>
    %48 = arith.cmpf ogt, %46, %47 : vector<128x128xf32>
    %cst_17 = arith.constant 2.000000e-01 : f32
    %49 = vector.broadcast %cst_17 : f32 to vector<128x128xf32>
    %50 = arith.mulf %49, %46 : vector<128x128xf32>
    %51 = arith.select %48, %46, %50 : vector<128x128xi1>, vector<128x128xf32>
    %c0_18 = arith.constant 0 : index
    %c0_19 = arith.constant 0 : index
    %52 = vector.load %arg1[%c0_18, %c0_19] : memref<128x128xbf16, #tpu.memory_space<vmem>>, vector<128x128xbf16>
    %53 = arith.extf %52 : vector<128x128xbf16> to vector<128x128xf32>
    %54 = arith.addf %51, %53 : vector<128x128xf32>
    %cst_20 = arith.constant dense<0xFF800000> : vector<128xf32>
    %55 = vector.multi_reduction <maximumf>, %54, %cst_20 [1] : vector<128x128xf32> to vector<128xf32>
    %56 = vector.shape_cast %55 : vector<128xf32> to vector<128x1xf32>
    %57 = vector.broadcast %56 : vector<128x1xf32> to vector<128x128xf32>
    %58 = arith.subf %54, %57 : vector<128x128xf32>
    %59 = math.exp %58 : vector<128x128xf32>
    %cst_21 = arith.constant dense<0.000000e+00> : vector<128xf32>
    %60 = vector.multi_reduction <add>, %59, %cst_21 [1] : vector<128x128xf32> to vector<128xf32>
    %61 = vector.shape_cast %60 : vector<128xf32> to vector<128x1xf32>
    %62 = vector.extract_strided_slice %40 {offsets = [0, 128], sizes = [128, 128], strides = [1, 1]} : vector<128x256xf32> to vector<128x128xf32>
    %63 = arith.truncf %59 : vector<128x128xf32> to vector<128x128xbf16>
    %64 = arith.truncf %62 : vector<128x128xf32> to vector<128x128xbf16>
    %cst_22 = arith.constant dense<0.000000e+00> : vector<128x128xf32>
    %65 = tpu.matmul %63, %64, %cst_22 {dimension_numbers = #tpu.dot_dimension_numbers<[1], [0], [0], [1], [0, 0, 1, 1], [], []>} : vector<128x128xbf16>, vector<128x128xbf16>, vector<128x128xf32> -> vector<128x128xf32>
    %66 = tpu.reciprocal %61 {approx = true} : vector<128x1xf32> -> vector<128x1xf32>
    %67 = vector.broadcast %66 : vector<128x1xf32> to vector<128x128xf32>
    %68 = arith.mulf %65, %67 : vector<128x128xf32>
    %69 = tpu.iota {dimensions = array<i32: 1>} : vector<128x128xi32>
    %c8_i32 = arith.constant 8 : i32
    %70 = vector.broadcast %c8_i32 : i32 to vector<128x128xi32>
    %71 = arith.cmpi slt, %69, %70 : vector<128x128xi32>
    %cst_23 = arith.constant -9.000000e+15 : f32
    %72 = vector.broadcast %cst_23 : f32 to vector<128x128xf32>
    %73 = arith.select %71, %68, %72 : vector<128x128xi1>, vector<128x128xf32>
    %cst_24 = arith.constant dense<0xFF800000> : vector<128xf32>
    %74 = vector.multi_reduction <maximumf>, %73, %cst_24 [1] : vector<128x128xf32> to vector<128xf32>
    %75 = vector.shape_cast %74 : vector<128xf32> to vector<128x1xf32>
    %76 = vector.broadcast %75 : vector<128x1xf32> to vector<128x128xf32>
    %77 = arith.subf %73, %76 : vector<128x128xf32>
    %78 = math.exp %77 : vector<128x128xf32>
    %cst_25 = arith.constant dense<0.000000e+00> : vector<128xf32>
    %79 = vector.multi_reduction <add>, %78, %cst_25 [1] : vector<128x128xf32> to vector<128xf32>
    %80 = vector.shape_cast %79 : vector<128xf32> to vector<128x1xf32>
    %81 = math.log %80 : vector<128x1xf32>
    %82 = vector.broadcast %81 : vector<128x1xf32> to vector<128x128xf32>
    %83 = arith.subf %77, %82 : vector<128x128xf32>
    %c0_26 = arith.constant 0 : index
    %c0_27 = arith.constant 0 : index
    %84 = vector.load %arg4[%c0_26, %c0_27] : memref<128x128xf32, #tpu.memory_space<vmem>>, vector<128x128xf32>
    tpu.vector_store %arg4[%c0_26, %c0_27], %83 {strides = array<i32>} : memref<128x128xf32, #tpu.memory_space<vmem>>, vector<128x128xf32>,
    return
  }
}

</mosaic_0001>

<bundles_post_ra>
// kernel: tpu_custom_call.1
= control target key start
LH: loop header
LB: loop body
LE: loop exit
PB: predicated region body
PF: predicated region fallthrough
CT: control target
= control target key end

     0   :  { %9 = vsyncpa [#allocation3], 0  ;;  %s3090_s0 = inlined_call_operand.hbm [shape: bf16[128,128], index: 0, kind: input, shape index: {}]   ;;  %s3091_s1 = inlined_call_operand.hbm [shape: bf16[128,128], index: 1, kind: input, shape index: {}]   ;;  %s3092_s2 = inlined_call_operand.hbm [shape: bf16[128,128], index: 2, kind: input, shape index: {}]   ;;  %s3093_s3 = inlined_call_operand.hbm [shape: bf16[128,256], index: 3, kind: input, shape index: {}]   ;;  %s3094_s4 = inlined_call_operand.hbm [shape: f32[128,128], index: 4, kind: output, shape index: {}]  }
   0x1   :  { %10 = vsyncpa [#allocation6], 0 }
   0x2   :  { %11 = vsyncpa [#allocation9], 0 }
   0x3   :  { %12 = vsyncpa [#allocation4], 0  ;;  %s2477_s15 = smov [#allocation5]   ;;  %s2478_s17 = smov [#allocation2]  }
   0x4   :  { %s30_s16 = sshll.u32 %s2477_s15, 4  ;;  %s18_s18 = sshll.u32 %s2478_s17, 4  ;;  %s31_s16 = int_to_ptr.vmem [resolvable:$true] %s30_s16  ;;  %s19_s18 = int_to_ptr.vmem [resolvable:$true] %s18_s18 }
   0x5   :  { %s2377_s19 = scalar_lea.vmem %s31_s16, 1024  ;;  %p2382_p1 = scmp.lt.s32.totalorder %s31_s16, %s31_s16 }
   0x6   :  { %p2378_p0 = scmp.ne.s32.totalorder %s31_s16, %s2377_s19  ;;  %p2383_p2 = scmp.lt.s32.totalorder %s2377_s19, %s2377_s19 }
   0x8   :  { %p2384_p3 = por %p2383_p2, %p2382_p1 }
   0xa   :  { %p2385_p4 = pnand %p2384_p3, %p2378_p0 }
   0xc   :  { %2388 = shalt.err (!%p2385_p4)
}
   0xd   :  { %s2479_s20 = smov 64   ;;  %s2480_s21 = smov 4  }
   0xe   :  { %36 = dma.hbm_to_vmem [thread:$0]  %s3091_s1, 1024, %s31_s16, [#allocation6], %s2479_s20, %s2479_s20, %s2480_s21  }
   0xf   :  { %s2397_s24 = scalar_lea.vmem %s19_s18, 1024  ;;  %p2402_p6 = scmp.lt.s32.totalorder %s19_s18, %s19_s18 }
  0x10   :  { %p2398_p5 = scmp.ne.s32.totalorder %s19_s18, %s2397_s24  ;;  %p2403_p7 = scmp.lt.s32.totalorder %s2397_s24, %s2397_s24 }
  0x12   :  { %p2404_p8 = por %p2403_p7, %p2402_p6 }
  0x14   :  { %p2405_p9 = pnand %p2404_p8, %p2398_p5 }
  0x16   :  { %2408 = shalt.err (!%p2405_p9)
}
  0x17   :  { %24 = dma.hbm_to_vmem [thread:$0]  %s3090_s0, 1024, %s19_s18, [#allocation3], %s2479_s20, %s2479_s20, %s2480_s21  }
  0x18   :  { %s2481_s27 = smov [#allocation7]   ;;  %s2482_s29 = smov [#allocation8]  }
  0x19   :  { %s42_s28 = sshll.u32 %s2481_s27, 4  ;;  %s54_s30 = sshll.u32 %s2482_s29, 4  ;;  %s43_s28 = int_to_ptr.vmem [resolvable:$true] %s42_s28  ;;  %s55_s30 = int_to_ptr.vmem [resolvable:$true] %s54_s30 }
  0x1a   :  { %s2417_s5 = scalar_lea.vmem %s43_s28, 1024  ;;  %p2422_p11 = scmp.lt.s32.totalorder %s43_s28, %s43_s28 }
  0x1b   :  { %p2418_p10 = scmp.ne.s32.totalorder %s43_s28, %s2417_s5  ;;  %p2423_p12 = scmp.lt.s32.totalorder %s2417_s5, %s2417_s5 }
  0x1d   :  { %p2424_p13 = por %p2423_p12, %p2422_p11 }
  0x1f   :  { %p2425_p0 = pnand %p2424_p13, %p2418_p10 }
  0x21   :  { %2428 = shalt.err (!%p2425_p0)
}
  0x22   :  { %48 = dma.hbm_to_vmem [thread:$0]  %s3092_s2, 1024, %s43_s28, [#allocation6], %s2479_s20, %s2479_s20, %s2480_s21  }
  0x23   :  { %s2437_s7 = scalar_lea.vmem %s55_s30, 2048  ;;  %p2442_p2 = scmp.lt.s32.totalorder %s55_s30, %s55_s30 }
  0x24   :  { %p2438_p1 = scmp.ne.s32.totalorder %s55_s30, %s2437_s7  ;;  %p2443_p3 = scmp.lt.s32.totalorder %s2437_s7, %s2437_s7 }
  0x26   :  { %p2444_p4 = por %p2443_p3, %p2442_p2 }
  0x28   :  { %p2445_p5 = pnand %p2444_p4, %p2438_p1 }
  0x2a   :  { %2448 = shalt.err (!%p2445_p5)
}
  0x2b   :  { %s2483_s0 = smov 128   ;;  %s2484_s8 = smov 8  }
  0x2c   :  { %60 = dma.hbm_to_vmem [thread:$0]  %s3093_s3, 2048, %s55_s30, [#allocation9], %s2483_s0, %s2483_s0, %s2484_s8  }
  0x2d   :  { %2469 = dma.done.wait [#allocation3], 1024  }
  0x2e   :  { %2470 = vsyncadd [#allocation3], 4294966272 }
  0x2f   :  { %2471 = dma.done.wait [#allocation6], 2048  }
  0x30   :  { %2472 = vsyncadd [#allocation6], 4294965248 }
  0x31   :  { %2473 = dma.done.wait [#allocation9], 2048  }
  0x32   :  { %2474 = vsyncadd [#allocation9], 4294965248  ;;  %v2105_v0 = vld [vmem:[#allocation7 + $0x38] sm:$0xff]   ;;  %v2106_v1 = vld [vmem:[#allocation7 + $0x30] sm:$0xff]   ;;  %v2485_v16 = vmov 32   ;;  %s2486_s2 = smov 95  }
  0x33   :  { %1995 = vmatprep.subr.bf16.mxu0 %v2105_v0  ;;  %v2107_v2 = vld [vmem:[#allocation7 + $0x28] sm:$0xff]   ;;  %v2108_v3 = vld [vmem:[#allocation7 + $0x20] sm:$0xff]   ;;  %v2109_v5 = vld [vmem:[#allocation7 + $0x18] sm:$0xff]   ;;  %2104 = vset.pattern.permute.xlu1 %v2485_v16  ;;  %s2488_s3 = smov [#allocation10]  }
  0x34   :  { %1996 = vmatpush3.bf16.msra.mxu0 %v2105_v0  ;;  %v2113_v4 = vld [vmem:[#allocation2] sm:$0xff]   ;;  %v2110_v6 = vld [vmem:[#allocation7 + $0x10] sm:$0xff]   ;;  %v2111_v7 = vld [vmem:[#allocation7 + $0x8] sm:$0xff]   ;;  %2103 = vset.pattern.permute.xlu0 %v2485_v16  ;;  %s1846_s11 = sshll.u32 %s2488_s3, 4  ;;  %s1847_s11 = int_to_ptr.vmem [resolvable:$true] %s1846_s11 }
  0x35   :  { %1997 = vmatprep.subr.bf16.mxu0 %v2106_v1  ;;  %2011 = vmatprep.mubr.bf16.mxu0 %v2113_v4  ;;  %v2112_v8 = vld [vmem:[#allocation7] sm:$0xff]   ;;  %v2114_v9 = vld [vmem:[#allocation2 + $0x8] sm:$0xff]   ;;  %v2115_v10 = vld [vmem:[#allocation2 + $0x10] sm:$0xff]   ;;  %s2449_s12 = scalar_lea.vmem %s1847_s11, 2048  ;;  %p2454_p7 = scmp.lt.s32.totalorder %s1847_s11, %s1847_s11 }
  0x36   :  { %v2116_v11 = vld [vmem:[#allocation2 + $0x18] sm:$0xff]   ;;  %v2117_v12 = vld [vmem:[#allocation2 + $0x20] sm:$0xff]   ;;  %v2118_v13 = vld [vmem:[#allocation2 + $0x28] sm:$0xff]   ;;  %p2450_p6 = scmp.ne.s32.totalorder %s1847_s11, %s2449_s12  ;;  %p2455_p8 = scmp.lt.s32.totalorder %s2449_s12, %s2449_s12 }
  0x37   :  { %v2119_v14 = vld [vmem:[#allocation2 + $0x30] sm:$0xff]   ;;  %v2120_v15 = vld [vmem:[#allocation2 + $0x38] sm:$0xff]  }
  0x38   :  { %1998 = vmatpush3.bf16.msra.mxu0 %v2106_v1  ;;  %v467_v1 = vlaneseq  ;;  %p2456_p9 = por %p2455_p8, %p2454_p7 }
  0x39   :  { %1999 = vmatprep.subr.bf16.mxu0 %v2107_v2 }
  0x3a   :  { %p2457_p10 = pnand %p2456_p9, %p2450_p6 }
  0x3c   :  { %2000 = vmatpush3.bf16.msra.mxu0 %v2107_v2 }
  0x3d   :  { %2001 = vmatprep.subr.bf16.mxu0 %v2108_v3 }
  0x40   :  { %2002 = vmatpush3.bf16.msra.mxu0 %v2108_v3  ;;  %v2550_v3 = vshrl.u32 %v467_v1, 7 }
  0x41   :  { %2003 = vmatprep.subr.bf16.mxu0 %v2109_v5 }
  0x44   :  { %2004 = vmatpush3.bf16.msra.mxu0 %v2109_v5  ;;  %v469_v5 = vsub.s32 0, %v2550_v3 }
  0x45   :  { %2005 = vmatprep.subr.bf16.mxu0 %v2110_v6 }
  0x48   :  { %2006 = vmatpush3.bf16.msra.mxu0 %v2110_v6 }
  0x49   :  { %2007 = vmatprep.subr.bf16.mxu0 %v2111_v7 }
  0x4c   :  { %2008 = vmatpush3.bf16.msra.mxu0 %v2111_v7 }
  0x4d   :  { %2009 = vmatprep.subr.bf16.mxu0 %v2112_v8 }
  0x50   :  { %2010 = vmatpush3.bf16.msra.mxu0 %v2112_v8  ;;  %v2559_v8 = vld [vmem:[#allocation5 + $0x28] sm:$0xff]  }
  0x53   :  { %2012 = vmatmul.mubr.bf16.vlgmr.msra.gmra.mxu0 %v2114_v9  ;;  %v2561_v9 = vld [vmem:[#allocation5] sm:$0xff]  }
  0x54   :  { %2015 = vmatprep.mubr.bf16.mxu0 %v2115_v10 }
  0x5b   :  { %2016 = vmatmul.mubr.bf16.gmra.mxu0 %v2116_v11 }
  0x5c   :  { %2019 = vmatprep.mubr.bf16.mxu0 %v2117_v12 }
  0x63   :  { %2020 = vmatmul.mubr.bf16.gmra.mxu0 %v2118_v13 }
  0x64   :  { %2023 = vmatprep.mubr.bf16.mxu0 %v2119_v14  ;;  %v1930_v14 = vunpack.c.l.bf16 %v2559_v8 }
  0x6b   :  { %2024 = vmatmul.mubr.bf16.gmra.mxu0 %v2120_v15  ;;  %v1910_v15 = vunpack.c.l.bf16 %v2561_v9 }
 0x113   :  { %v2013_v17 = vpop.f32.mrf.mxu0 }
 0x114   :  { %327 = vrot.lane.b32.xlu1 %v2013_v17, %s2486_s2 }
 0x115   :  { %v236_v18 = vpop.f32.mrf.mxu0 }
 0x116   :  { %323 = vrot.lane.b32.xlu0 %v236_v18, %s2486_s2 }
 0x117   :  { %v2014_v19 = vpop.f32.mrf.mxu0 }
 0x118   :  { %329 = vrot.lane.b32.xlu1 %v2014_v19, %s2486_s2  ;;  %v300_v39 = vpack.c.bf16 %v2014_v19, %v2013_v17 }
 0x119   :  { %v239_v20 = vpop.f32.mrf.mxu0 }
 0x11a   :  { %325 = vrot.lane.b32.xlu0 %v239_v20, %s2486_s2  ;;  %v299_v40 = vpack.c.bf16 %v239_v20, %v236_v18 }
 0x11b   :  { %v2017_v21 = vpop.f32.mrf.mxu0 }
 0x11d   :  { %v252_v22 = vpop.f32.mrf.mxu0 }
 0x11e   :  { %331 = vrot.lane.b32.xlu0 %v252_v22, %s2486_s2 }
 0x11f   :  { %v2018_v23 = vpop.f32.mrf.mxu0 }
 0x120   :  { %337 = vrot.lane.b32.xlu1 %v2018_v23, %s2486_s2  ;;  %v302_v37 = vpack.c.bf16 %v2018_v23, %v2017_v21 }
 0x121   :  { %v255_v24 = vpop.f32.mrf.mxu0 }
 0x122   :  { %335 = vrot.lane.b32.xlu0 %v2017_v21, %s2486_s2  ;;  %v301_v38 = vpack.c.bf16 %v255_v24, %v252_v22 }
 0x123   :  { %v2021_v25 = vpop.f32.mrf.mxu0 }
 0x124   :  { %333 = vrot.lane.b32.xlu1 %v255_v24, %s2486_s2 }
 0x125   :  { %v268_v26 = vpop.f32.mrf.mxu0 }
 0x126   :  { %339 = vrot.lane.b32.xlu0 %v268_v26, %s2486_s2 }
 0x127   :  { %v2022_v27 = vpop.f32.mrf.mxu0 }
 0x128   :  { %345 = vrot.lane.b32.xlu1 %v2022_v27, %s2486_s2  ;;  %v304_v35 = vpack.c.bf16 %v2022_v27, %v2021_v25 }
 0x129   :  { %v271_v28 = vpop.f32.mrf.mxu0 }
 0x12a   :  { %343 = vrot.lane.b32.xlu0 %v2021_v25, %s2486_s2  ;;  %v303_v36 = vpack.c.bf16 %v271_v28, %v268_v26 }
 0x12b   :  { %v2025_v29 = vpop.f32.mrf.mxu0 }
 0x12c   :  { %341 = vrot.lane.b32.xlu1 %v271_v28, %s2486_s2 }
 0x12d   :  { %v284_v30 = vpop.f32.mrf.mxu0 }
 0x12e   :  { %347 = vrot.lane.b32.xlu0 %v284_v30, %s2486_s2 }
 0x12f   :  { %v2026_v31 = vpop.f32.mrf.mxu0 }
 0x130   :  { %408 = vperm.xlu1 %2104, %v239_v20   ;;  %v306_v32 = vpack.c.bf16 %v2026_v31, %v2025_v29 }
 0x131   :  { %v287_v33 = vpop.f32.mrf.mxu0 }
 0x132   :  { %351 = vrot.lane.b32.xlu0 %v2025_v29, %s2486_s2  ;;  %2027 = vmatprep.subr.bf16.mxu1 %v306_v32  ;;  %v305_v34 = vpack.c.bf16 %v287_v33, %v284_v30 }
 0x133   :  { %2028 = vmatpush3.bf16.msra.mxu1 %v306_v32 }
 0x134   :  { %412 = vperm.xlu1 %2104, %v2013_v17   ;;  %2029 = vmatprep.subr.bf16.mxu1 %v305_v34 }
 0x136   :  { %404 = vperm.xlu0 %2103, %v236_v18  }
 0x137   :  { %2030 = vmatpush3.bf16.msra.mxu1 %v305_v34 }
 0x138   :  { %420 = vperm.xlu1 %2104, %v252_v22   ;;  %2031 = vmatprep.subr.bf16.mxu1 %v304_v35 }
 0x13a   :  { %416 = vperm.xlu0 %2103, %v2014_v19  }
 0x13b   :  { %2032 = vmatpush3.bf16.msra.mxu1 %v304_v35 }
 0x13c   :  { %428 = vperm.xlu1 %2104, %v2017_v21   ;;  %2033 = vmatprep.subr.bf16.mxu1 %v303_v36 }
 0x13e   :  { %424 = vperm.xlu0 %2103, %v255_v24   ;;  %v1911_v24 = vunpack.c.h.bf16 %v2561_v9 }
 0x13f   :  { %2034 = vmatpush3.bf16.msra.mxu1 %v303_v36 }
 0x140   :  { %2035 = vmatprep.subr.bf16.mxu1 %v302_v37  ;;  %353 = vrot.lane.b32.xlu1 %v2026_v31, %s2486_s2 }
 0x142   :  { %432 = vperm.xlu0 %2103, %v2018_v23  }
 0x143   :  { %2036 = vmatpush3.bf16.msra.mxu1 %v302_v37 }
 0x144   :  { %2037 = vmatprep.subr.bf16.mxu1 %v301_v38  ;;  %349 = vrot.lane.b32.xlu1 %v287_v33, %s2486_s2 }
 0x146   :  { %436 = vperm.xlu0 %2103, %v268_v26  }
 0x147   :  { %2038 = vmatpush3.bf16.msra.mxu1 %v301_v38  ;;  %v2595_v38 = vld [vmem:[#allocation5 + $0x10] sm:$0xff]  }
 0x148   :  { %2039 = vmatprep.subr.bf16.mxu1 %v300_v39 }
 0x14a   :  { %440 = vperm.xlu0 %2103, %v271_v28  }
 0x14b   :  { %2040 = vmatpush3.bf16.msra.mxu1 %v300_v39 }
 0x14c   :  { %2041 = vmatprep.subr.bf16.mxu1 %v299_v40 }
 0x14e   :  { %444 = vperm.xlu0 %2103, %v2021_v25  }
 0x14f   :  { %2042 = vmatpush3.bf16.msra.mxu1 %v299_v40 }
 0x152   :  { %448 = vperm.xlu0 %2103, %v2022_v27   ;;  %v2578_v27 = vld [vmem:[#allocation5 + $0x8] sm:$0xff]  }
 0x153   :  { %v1915_v35 = vunpack.c.h.bf16 %v2578_v27 }
 0x156   :  { %452 = vperm.xlu0 %2103, %v284_v30   ;;  %v1914_v30 = vunpack.c.l.bf16 %v2578_v27 }
 0x15a   :  { %456 = vperm.xlu0 %2103, %v287_v33  }
 0x15e   :  { %460 = vperm.xlu0 %2103, %v2025_v29  }
 0x162   :  { %464 = vperm.xlu0 %2103, %v2026_v31  }
 0x186   :  { %v328_v42 = vpop.permute.xlu1 %327 }
 0x188   :  { %v324_v41 = vpop.permute.xlu0 %323 }
 0x189   :  { %371 = vxpose.xlu1.b32.start [1/16] (narrow) %v324_v41, 8  ;;  %v1918_v41 = vunpack.c.l.bf16 %v2595_v38 }
 0x18a   :  { %v330_v44 = vpop.permute.xlu1 %329 }
 0x18c   :  { %v326_v43 = vpop.permute.xlu0 %325 }
 0x18d   :  { %372 = vxpose.xlu1.b32.cont [2/16] (narrow) %v326_v43, 8 }
 0x190   :  { %v332_v46 = vpop.permute.xlu0 %331 }
 0x191   :  { %373 = vxpose.xlu1.b32.cont [3/16] (narrow) %v328_v42, 8 }
 0x192   :  { %v338_v45 = vpop.permute.xlu1 %337 }
 0x194   :  { %v336_v48 = vpop.permute.xlu0 %335 }
 0x195   :  { %374 = vxpose.xlu1.b32.cont [4/16] (narrow) %v330_v44, 8 }
 0x196   :  { %v334_v47 = vpop.permute.xlu1 %333 }
 0x198   :  { %v340_v51 = vpop.permute.xlu0 %339 }
 0x199   :  { %375 = vxpose.xlu1.b32.cont [5/16] (narrow) %v332_v46, 8  ;;  %v1919_v46 = vunpack.c.h.bf16 %v2595_v38 }
 0x19a   :  { %v346_v49 = vpop.permute.xlu1 %345 }
 0x19c   :  { %v344_v54 = vpop.permute.xlu0 %343 }
 0x19d   :  { %376 = vxpose.xlu1.b32.cont [6/16] (narrow) %v334_v47, 8 }
 0x19e   :  { %v342_v50 = vpop.permute.xlu1 %341 }
 0x1a0   :  { %v348_v57 = vpop.permute.xlu0 %347 }
 0x1a1   :  { %377 = vxpose.xlu1.b32.cont [7/16] (narrow) %v336_v48, 8 }
 0x1a4   :  { %v352_v60 = vpop.permute.xlu0 %351 }
 0x1a5   :  { %378 = vxpose.xlu1.b32.cont [8/16] (narrow) %v338_v45, 8 }
 0x1a9   :  { %379 = vxpose.xlu1.b32.cont [9/16] (narrow) %v340_v51, 8 }
 0x1ab   :  { %v409_v52 = vpop.permute.xlu1 %408 }
 0x1ad   :  { %380 = vxpose.xlu1.b32.cont [10/16] (narrow) %v342_v50, 8 }
 0x1af   :  { %v413_v53 = vpop.permute.xlu1 %412 }
 0x1b1   :  { %381 = vxpose.xlu1.b32.cont [11/16] (narrow) %v344_v54, 8  ;;  %v405_v61 = vpop.permute.xlu0 %404 }
 0x1b3   :  { %v421_v55 = vpop.permute.xlu1 %420 }
 0x1b5   :  { %382 = vxpose.xlu1.b32.cont [12/16] (narrow) %v346_v49, 8  ;;  %v417_v62 = vpop.permute.xlu0 %416  ;;  %v2612_v49 = vld [vmem:[#allocation5 + $0x18] sm:$0xff]  }
 0x1b7   :  { %v2545_v56 = vpop.permute.xlu1 %428 }
 0x1b9   :  { %383 = vxpose.xlu1.b32.cont [13/16] (narrow) %v348_v57, 8  ;;  %v425_v63 = vpop.permute.xlu0 %424 }
 0x1bb   :  { %v354_v58 = vpop.permute.xlu1 %353 }
 0x1bd   :  { %v433_v0 = vpop.permute.xlu0 %432 }
 0x1bf   :  { %v350_v59 = vpop.permute.xlu1 %349 }
 0x1c0   :  { %384 = vxpose.xlu1.b32.cont [14/16] (narrow) %v350_v59, 8 }
 0x1c1   :  { %v2547_v2 = vpop.permute.xlu0 %436 }
 0x1c4   :  { %385 = vxpose.xlu1.b32.cont [15/16] (narrow) %v352_v60, 8 }
 0x1c5   :  { %v2552_v4 = vpop.permute.xlu0 %440 }
 0x1c8   :  { %386 = vxpose.xlu1.b32.end [16/16] (narrow) %v354_v58, 8  ;;  %v1923_v58 = vunpack.c.h.bf16 %v2612_v49 }
 0x1c9   :  { %v445_v10 = vpop.permute.xlu0 %444 }
 0x1cd   :  { %v449_v51 = vpop.permute.xlu0 %448 }
 0x208   :  { %v387_v6 = vpop.trf.xlu1 }
 0x209   :  { %v2557_v7 = vrot.slane %v387_v6, %v469_v5 }
 0x20b   :  { %v481_v11 = vadd.f32 %v2557_v7, %v445_v10  ;;  %v471_v12 = vadd.f32 %v2557_v7, %v405_v61  ;;  %v472_v13 = vadd.f32 %v2557_v7, %v409_v52  ;;  %v473_v16 = vadd.f32 %v2557_v7, %v413_v53  ;;  %v2629_v61 = vld [vmem:[#allocation5 + $0x20] sm:$0xff]  }
 0x20c   :  { %v474_v28 = vadd.f32 %v2557_v7, %v417_v62  ;;  %v475_v33 = vadd.f32 %v2557_v7, %v421_v55  ;;  %v476_v39 = vadd.f32 %v2557_v7, %v425_v63  ;;  %v477_v44 = vadd.f32 %v2557_v7, %v2545_v56  ;;  %v453_v63 = vpop.permute.xlu0 %452 }
 0x20d   :  { %vm497_vm0 = vcmp.gt.f32.partialorder %v481_v11, 0.0  ;;  %v513_v17 = vmul.f32 0.2, %v481_v11  ;;  %vm487_vm1 = vcmp.gt.f32.partialorder %v471_v12, 0.0  ;;  %v503_v18 = vmul.f32 0.2, %v471_v12 }
 0x20e   :  { %vm488_vm2 = vcmp.gt.f32.partialorder %v472_v13, 0.0  ;;  %v504_v19 = vmul.f32 0.2, %v472_v13  ;;  %v505_v26 = vmul.f32 0.2, %v473_v16  ;;  %vm489_vm3 = vcmp.gt.f32.partialorder %v473_v16, 0.0 }
 0x20f   :  { %v529_v20 = vsel %vm497_vm0, %v481_v11, %v513_v17  ;;  %v519_v21 = vsel %vm487_vm1, %v471_v12, %v503_v18  ;;  %v506_v32 = vmul.f32 0.2, %v474_v28  ;;  %vm490_vm4 = vcmp.gt.f32.partialorder %v474_v28, 0.0 }
 0x210   :  { %v2571_v22 = vadd.f32 %v1930_v14, %v529_v20  ;;  %v2575_v23 = vadd.f32 %v1910_v15, %v519_v21  ;;  %v520_v25 = vsel %vm488_vm2, %v472_v13, %v504_v19  ;;  %v521_v31 = vsel %vm489_vm3, %v473_v16, %v505_v26  ;;  %v457_v12 = vpop.permute.xlu0 %456  ;;  %v2653_v26 = vld [vmem:[#allocation5 + $0x30] sm:$0xff]  }
 0x211   :  { %v2585_v29 = vadd.f32 %v1911_v24, %v520_v25  ;;  %v2592_v34 = vadd.f32 %v1914_v30, %v521_v31  ;;  %v522_v36 = vsel %vm490_vm4, %v474_v28, %v506_v32  ;;  %v507_v37 = vmul.f32 0.2, %v475_v33 }
 0x212   :  { %603 = vmax.xlane.f32.xlu1 %v2571_v22  ;;  %583 = vmax.xlane.f32.xlu0 %v2575_v23  ;;  %vm491_vm5 = vcmp.gt.f32.partialorder %v475_v33, 0.0  ;;  %v2601_v40 = vadd.f32 %v1915_v35, %v522_v36  ;;  %v508_v43 = vmul.f32 0.2, %v476_v39  ;;  %vm492_vm6 = vcmp.gt.f32.partialorder %v476_v39, 0.0 }
 0x213   :  { %v523_v42 = vsel %vm491_vm5, %v475_v33, %v507_v37  ;;  %v509_v48 = vmul.f32 0.2, %v477_v44  ;;  %v478_v50 = vadd.f32 %v2557_v7, %v433_v0  ;;  %vm493_vm7 = vcmp.gt.f32.partialorder %v477_v44, 0.0 }
 0x214   :  { %v2609_v45 = vadd.f32 %v1918_v41, %v523_v42  ;;  %v524_v47 = vsel %vm492_vm6, %v476_v39, %v508_v43  ;;  %v1922_v53 = vunpack.c.l.bf16 %v2612_v49  ;;  %v479_v56 = vadd.f32 %v2557_v7, %v2547_v2  ;;  %v461_v31 = vpop.permute.xlu0 %460 }
 0x215   :  { %v2618_v52 = vadd.f32 %v1919_v46, %v524_v47  ;;  %v525_v54 = vsel %vm493_vm7, %v477_v44, %v509_v48  ;;  %v510_v55 = vmul.f32 0.2, %v478_v50  ;;  %vm494_vm8 = vcmp.gt.f32.partialorder %v478_v50, 0.0 }
 0x216   :  { %585 = vmax.xlane.f32.xlu0 %v2585_v29  ;;  %v2626_v57 = vadd.f32 %v1922_v53, %v525_v54  ;;  %v511_v60 = vmul.f32 0.2, %v479_v56  ;;  %v480_v62 = vadd.f32 %v2557_v7, %v2552_v4  ;;  %vm495_vm9 = vcmp.gt.f32.partialorder %v479_v56, 0.0 }
 0x217   :  { %v526_v59 = vsel %vm494_vm8, %v478_v50, %v510_v55  ;;  %v1926_v2 = vunpack.c.l.bf16 %v2629_v61  ;;  %v482_v11 = vadd.f32 %v2557_v7, %v449_v51  ;;  %v1927_v13 = vunpack.c.h.bf16 %v2629_v61  ;;  %v2669_v50 = vld [vmem:[#allocation5 + $0x38] sm:$0xff]  }
 0x218   :  { %v2636_v0 = vadd.f32 %v1923_v58, %v526_v59  ;;  %v527_v6 = vsel %vm495_vm9, %v479_v56, %v511_v60  ;;  %v512_v10 = vmul.f32 0.2, %v480_v62  ;;  %vm496_vm10 = vcmp.gt.f32.partialorder %v480_v62, 0.0  ;;  %v465_v42 = vpop.permute.xlu0 %464 }
 0x219   :  { %v2643_v4 = vadd.f32 %v1926_v2, %v527_v6  ;;  %v514_v17 = vmul.f32 0.2, %v482_v11  ;;  %v483_v18 = vadd.f32 %v2557_v7, %v453_v63  ;;  %vm498_vm11 = vcmp.gt.f32.partialorder %v482_v11, 0.0 }
 0x21a   :  { %587 = vmax.xlane.f32.xlu0 %v2592_v34  ;;  %v528_v16 = vsel %vm496_vm10, %v480_v62, %v512_v10  ;;  %v1931_v20 = vunpack.c.h.bf16 %v2559_v8  ;;  %v484_v28 = vadd.f32 %v2557_v7, %v457_v12  ;;  %v1934_v33 = vunpack.c.l.bf16 %v2653_v26 }
 0x21b   :  { %v2650_v19 = vadd.f32 %v1927_v13, %v528_v16  ;;  %v530_v21 = vsel %vm498_vm11, %v482_v11, %v514_v17  ;;  %v515_v25 = vmul.f32 0.2, %v483_v18  ;;  %vm499_vm12 = vcmp.gt.f32.partialorder %v483_v18, 0.0 }
 0x21c   :  { %v2659_v32 = vadd.f32 %v1931_v20, %v530_v21  ;;  %v516_v37 = vmul.f32 0.2, %v484_v28  ;;  %v485_v39 = vadd.f32 %v2557_v7, %v461_v31  ;;  %vm500_vm13 = vcmp.gt.f32.partialorder %v484_v28, 0.0 }
 0x21d   :  { %v531_v36 = vsel %vm499_vm12, %v483_v18, %v515_v25  ;;  %v1935_v44 = vunpack.c.h.bf16 %v2653_v26  ;;  %v486_v51 = vadd.f32 %v2557_v7, %v465_v42  ;;  %v1938_v55 = vunpack.c.l.bf16 %v2669_v50 }
 0x21e   :  { %589 = vmax.xlane.f32.xlu0 %v2601_v40  ;;  %v2666_v43 = vadd.f32 %v1934_v33, %v531_v36  ;;  %v532_v47 = vsel %vm500_vm13, %v484_v28, %v516_v37  ;;  %v517_v48 = vmul.f32 0.2, %v485_v39  ;;  %vm501_vm14 = vcmp.gt.f32.partialorder %v485_v39, 0.0 }
 0x21f   :  { %v2675_v54 = vadd.f32 %v1935_v44, %v532_v47  ;;  %v518_v59 = vmul.f32 0.2, %v486_v51  ;;  %vm502_vm15 = vcmp.gt.f32.partialorder %v486_v51, 0.0  ;;  %v1939_v7 = vunpack.c.h.bf16 %v2669_v50 }
 0x220   :  { %v533_v56 = vsel %vm501_vm14, %v485_v39, %v517_v48 }
 0x221   :  { %v2681_v60 = vadd.f32 %v1938_v55, %v533_v56  ;;  %v534_v62 = vsel %vm502_vm15, %v486_v51, %v518_v59 }
 0x222   :  { %591 = vmax.xlane.f32.xlu0 %v2609_v45  ;;  %v2687_v63 = vadd.f32 %v1939_v7, %v534_v62 }
 0x226   :  { %593 = vmax.xlane.f32.xlu0 %v2618_v52 }
 0x22a   :  { %595 = vmax.xlane.f32.xlu0 %v2626_v57 }
 0x22e   :  { %597 = vmax.xlane.f32.xlu0 %v2636_v0 }
 0x232   :  { %599 = vmax.xlane.f32.xlu0 %v2643_v4 }
 0x236   :  { %601 = vmax.xlane.f32.xlu0 %v2650_v19 }
 0x23a   :  { %605 = vmax.xlane.f32.xlu0 %v2659_v32 }
 0x23e   :  { %607 = vmax.xlane.f32.xlu0 %v2666_v43 }
 0x242   :  { %609 = vmax.xlane.f32.xlu0 %v2675_v54 }
 0x246   :  { %611 = vmax.xlane.f32.xlu0 %v2681_v60 }
 0x24a   :  { %613 = vmax.xlane.f32.xlu0 %v2687_v63 }
 0x29b   :  { %v584_v6 = vpop.xlane.xlu0 %583 }
 0x29c   :  { %v615_v10 = vsub.f32 %v2575_v23, %v584_v6  ;;  %v604_v6 = vpop.xlane.xlu1 %603 }
 0x29e   :  { %v631_v11 = vmul.f32 1.442695, %v615_v10 }
 0x29f   :  { %v586_v12 = vpop.xlane.xlu0 %585 }
 0x2a0   :  { %v616_v16 = vsub.f32 %v2585_v29, %v586_v12  ;;  %2145 = vpow2.f32 %v631_v11 }
 0x2a2   :  { %v633_v17 = vmul.f32 1.442695, %v616_v16  ;;  %v625_v16 = vsub.f32 %v2571_v22, %v604_v6 }
 0x2a3   :  { %v588_v18 = vpop.xlane.xlu0 %587 }
 0x2a4   :  { %2147 = vpow2.f32 %v633_v17  ;;  %v617_v21 = vsub.f32 %v2592_v34, %v588_v18 }
 0x2a6   :  { %v635_v25 = vmul.f32 1.442695, %v617_v21 }
 0x2a7   :  { %v590_v28 = vpop.xlane.xlu0 %589 }
 0x2a8   :  { %2149 = vpow2.f32 %v635_v25  ;;  %v618_v31 = vsub.f32 %v2601_v40, %v590_v28  ;;  %v651_v25 = vmul.f32 1.442695, %v625_v16 }
 0x2aa   :  { %v637_v36 = vmul.f32 1.442695, %v618_v31 }
 0x2ab   :  { %v592_v37 = vpop.xlane.xlu0 %591 }
 0x2ac   :  { %2151 = vpow2.f32 %v637_v36  ;;  %v619_v23 = vsub.f32 %v2609_v45, %v592_v37 }
 0x2ad   :  { %v2146_v39 = vpop.eup %2145 }
 0x2ae   :  { %v639_v42 = vmul.f32 1.442695, %v619_v23  ;;  %663 = vadd.xlane.f32.xlu0 %v2146_v39 }
 0x2af   :  { %v594_v29 = vpop.xlane.xlu0 %593 }
 0x2b0   :  { %2153 = vpow2.f32 %v639_v42  ;;  %v620_v47 = vsub.f32 %v2618_v52, %v594_v29 }
 0x2b1   :  { %v2148_v48 = vpop.eup %2147 }
 0x2b2   :  { %v641_v51 = vmul.f32 1.442695, %v620_v47  ;;  %v695_v34 = vpack.c.bf16 %v2148_v48, %v2146_v39  ;;  %665 = vadd.xlane.f32.xlu0 %v2148_v48 }
 0x2b3   :  { %v596_v56 = vpop.xlane.xlu0 %595 }
 0x2b4   :  { %2155 = vpow2.f32 %v641_v51  ;;  %v621_v40 = vsub.f32 %v2626_v57, %v596_v56  ;;  %2043 = vmatprep.mubr.bf16.mxu1 %v695_v34 }
 0x2b5   :  { %v2150_v59 = vpop.eup %2149 }
 0x2b6   :  { %v643_v62 = vmul.f32 1.442695, %v621_v40  ;;  %667 = vadd.xlane.f32.xlu0 %v2150_v59 }
 0x2b7   :  { %v598_v45 = vpop.xlane.xlu0 %597 }
 0x2b8   :  { %2157 = vpow2.f32 %v643_v62  ;;  %v622_v10 = vsub.f32 %v2636_v0, %v598_v45 }
 0x2b9   :  { %v2152_v11 = vpop.eup %2151 }
 0x2ba   :  { %v645_v12 = vmul.f32 1.442695, %v622_v10  ;;  %v696_v52 = vpack.c.bf16 %v2152_v11, %v2150_v59  ;;  %669 = vadd.xlane.f32.xlu0 %v2152_v11 }
 0x2bb   :  { %v600_v17 = vpop.xlane.xlu0 %599 }
 0x2bc   :  { %2159 = vpow2.f32 %v645_v12  ;;  %v623_v18 = vsub.f32 %v2643_v4, %v600_v17  ;;  %2044 = vmatmul.mubr.bf16.vlgmr.msra.gmra.mxu1 %v696_v52 }
 0x2bd   :  { %v2154_v57 = vpop.eup %2153 }
 0x2be   :  { %v647_v21 = vmul.f32 1.442695, %v623_v18  ;;  %671 = vadd.xlane.f32.xlu0 %v2154_v57 }
 0x2bf   :  { %v602_v28 = vpop.xlane.xlu0 %601 }
 0x2c0   :  { %2161 = vpow2.f32 %v647_v21  ;;  %v624_v31 = vsub.f32 %v2650_v19, %v602_v28  ;;  %v2126_v28 = vld [vmem:[#allocation8 + $0x64] ss:$8 sps:$4 sm:$0xff]  }
 0x2c1   :  { %v2156_v0 = vpop.eup %2155  ;;  %2163 = vpow2.f32 %v651_v25  ;;  %v2123_v25 = vld [vmem:[#allocation8 + $0x74] ss:$8 sps:$4 sm:$0xff]  }
 0x2c2   :  { %v649_v36 = vmul.f32 1.442695, %v624_v31  ;;  %673 = vadd.xlane.f32.xlu1 %v2156_v0  ;;  %v697_v37 = vpack.c.bf16 %v2156_v0, %v2154_v57  ;;  %1032 = vmatprep.subr.bf16.mxu0 %v2123_v25  ;;  %v2124_v31 = vld [vmem:[#allocation8 + $0x60] ss:$8 sps:$4 sm:$0xff]   ;;  %v2129_v0 = vld [vmem:[#allocation8 + $0x54] ss:$8 sps:$4 sm:$0xff]  }
 0x2c3   :  { %v606_v22 = vpop.xlane.xlu0 %605 }
 0x2c4   :  { %2165 = vpow2.f32 %v649_v36  ;;  %v626_v23 = vsub.f32 %v2659_v32, %v606_v22  ;;  %2047 = vmatprep.mubr.bf16.mxu1 %v697_v37  ;;  %v2127_v36 = vld [vmem:[#allocation8 + $0x50] ss:$8 sps:$4 sm:$0xff]   ;;  %v2132_v37 = vld [vmem:[#allocation8 + $0x44] ss:$8 sps:$4 sm:$0xff]   ;;  %v2130_v22 = vld [vmem:[#allocation8 + $0x40] ss:$8 sps:$4 sm:$0xff]  }
 0x2c5   :  { %v2158_v4 = vpop.eup %2157 }
 0x2c6   :  { %v653_v39 = vmul.f32 1.442695, %v626_v23  ;;  %675 = vadd.xlane.f32.xlu0 %v2158_v4  ;;  %v2133_v23 = vld [vmem:[#allocation8 + $0x30] ss:$8 sps:$4 sm:$0xff]  }
 0x2c7   :  { %v608_v42 = vpop.xlane.xlu0 %607 }
 0x2c8   :  { %2167 = vpow2.f32 %v653_v39  ;;  %v627_v29 = vsub.f32 %v2666_v43, %v608_v42  ;;  %v2138_v39 = vld [vmem:[#allocation8 + $0x24] ss:$8 sps:$4 sm:$0xff]   ;;  %v2136_v42 = vld [vmem:[#allocation8 + $0x20] ss:$8 sps:$4 sm:$0xff]  }
 0x2c9   :  { %v2160_v47 = vpop.eup %2159 }
 0x2ca   :  { %v655_v48 = vmul.f32 1.442695, %v627_v29  ;;  %677 = vadd.xlane.f32.xlu1 %v2160_v47  ;;  %v698_v19 = vpack.c.bf16 %v2160_v47, %v2158_v4  ;;  %v2135_v4 = vld [vmem:[#allocation8 + $0x34] ss:$8 sps:$4 sm:$0xff]   ;;  %v2139_v47 = vld [vmem:[#allocation8 + $0x10] ss:$8 sps:$4 sm:$0xff]  }
 0x2cb   :  { %v610_v51 = vpop.xlane.xlu0 %609  ;;  %v2141_v29 = vld [vmem:[#allocation8 + $0x14] ss:$8 sps:$4 sm:$0xff]  }
 0x2cc   :  { %2169 = vpow2.f32 %v655_v48  ;;  %v628_v34 = vsub.f32 %v2675_v54, %v610_v51  ;;  %2048 = vmatmul.mubr.bf16.gmra.mxu1 %v698_v19  ;;  %v2487_v48 = vmov 0   ;;  %v2144_v19 = vld [vmem:[#allocation8 + $0x4] ss:$8 sps:$4 sm:$0xff]   ;;  %v2142_v51 = vld [vmem:[#allocation8] ss:$8 sps:$4 sm:$0xff]  }
 0x2cd   :  { %v2162_v56 = vpop.eup %2161  ;;  %1064 = vmatprep.mubr.bf16.mxu0 %v2487_v48 }
 0x2ce   :  { %v657_v40 = vmul.f32 1.442695, %v628_v34  ;;  %679 = vadd.xlane.f32.xlu0 %v2162_v56  ;;  %v2164_v59 = vpop.eup %2163 }
 0x2cf   :  { %v612_v32 = vpop.xlane.xlu0 %611 }
 0x2d0   :  { %2171 = vpow2.f32 %v657_v40  ;;  %v629_v62 = vsub.f32 %v2681_v60, %v612_v32 }
 0x2d1   :  { %v2166_v45 = vpop.eup %2165 }
 0x2d2   :  { %v659_v6 = vmul.f32 1.442695, %v629_v62  ;;  %683 = vadd.xlane.f32.xlu0 %v2164_v59  ;;  %681 = vadd.xlane.f32.xlu1 %v2166_v45  ;;  %v699_v43 = vpack.c.bf16 %v2166_v45, %v2162_v56 }
 0x2d3   :  { %v614_v10 = vpop.xlane.xlu0 %613 }
 0x2d4   :  { %2173 = vpow2.f32 %v659_v6  ;;  %v630_v11 = vsub.f32 %v2687_v63, %v614_v10  ;;  %2051 = vmatprep.mubr.bf16.mxu1 %v699_v43  ;;  %v2121_v63 = vld [vmem:[#allocation8 + $0x70] ss:$8 sps:$4 sm:$0xff]  }
 0x2d5   :  { %v2168_v54 = vpop.eup %2167  ;;  %1033 = vmatpush1.bf16.msra.mxu0 %v2121_v63 }
 0x2d6   :  { %v661_v12 = vmul.f32 1.442695, %v630_v11  ;;  %685 = vadd.xlane.f32.xlu1 %v2168_v54  ;;  %v700_v52 = vpack.c.bf16 %v2168_v54, %v2164_v59  ;;  %1034 = vmatprep.subr.bf16.mxu0 %v2126_v28 }
 0x2d8   :  { %2175 = vpow2.f32 %v661_v12  ;;  %2052 = vmatmul.mubr.bf16.gmra.mxu1 %v700_v52 }
 0x2d9   :  { %v2170_v16 = vpop.eup %2169  ;;  %1035 = vmatpush1.bf16.msra.mxu0 %v2124_v31 }
 0x2da   :  { %687 = vadd.xlane.f32.xlu0 %v2170_v16  ;;  %1036 = vmatprep.subr.bf16.mxu0 %v2129_v0 }
 0x2dd   :  { %v2172_v17 = vpop.eup %2171  ;;  %1037 = vmatpush1.bf16.msra.mxu0 %v2127_v36 }
 0x2de   :  { %689 = vadd.xlane.f32.xlu1 %v2172_v17  ;;  %v701_v60 = vpack.c.bf16 %v2172_v17, %v2170_v16  ;;  %1038 = vmatprep.subr.bf16.mxu0 %v2132_v37 }
 0x2e0   :  { %2055 = vmatprep.mubr.bf16.mxu1 %v701_v60 }
 0x2e1   :  { %v2174_v18 = vpop.eup %2173  ;;  %1039 = vmatpush1.bf16.msra.mxu0 %v2130_v22 }
 0x2e2   :  { %691 = vadd.xlane.f32.xlu0 %v2174_v18  ;;  %1040 = vmatprep.subr.bf16.mxu0 %v2135_v4 }
 0x2e5   :  { %v2176_v57 = vpop.eup %2175  ;;  %1041 = vmatpush1.bf16.msra.mxu0 %v2133_v23 }
 0x2e6   :  { %693 = vadd.xlane.f32.xlu1 %v2176_v57  ;;  %v702_v21 = vpack.c.bf16 %v2176_v57, %v2174_v18  ;;  %1042 = vmatprep.subr.bf16.mxu0 %v2138_v39 }
 0x2e8   :  { %2056 = vmatmul.mubr.bf16.gmra.mxu1 %v702_v21 }
 0x2e9   :  { %1043 = vmatpush1.bf16.msra.mxu0 %v2136_v42 }
 0x2ea   :  { %1044 = vmatprep.subr.bf16.mxu0 %v2141_v29 }
 0x2ed   :  { %1045 = vmatpush1.bf16.msra.mxu0 %v2139_v47 }
 0x2ee   :  { %1046 = vmatprep.subr.bf16.mxu0 %v2144_v19 }
 0x2f1   :  { %1047 = vmatpush1.bf16.msra.mxu0 %v2142_v51 }
 0x337   :  { %v664_v34 = vpop.xlane.xlu0 %663 }
 0x338   :  { %2177 = vrcp.f32 %v664_v34 }
 0x33b   :  { %v666_v56 = vpop.xlane.xlu0 %665 }
 0x33f   :  { %v668_v40 = vpop.xlane.xlu0 %667 }
 0x343   :  { %v670_v32 = vpop.xlane.xlu0 %669 }
 0x344   :  { %2179 = vrcp.f32 %v670_v32 }
 0x345   :  { %2181 = vrcp.f32 %v668_v40  ;;  %v2178_v6 = vpop.eup %2177 }
 0x346   :  { %2183 = vrcp.f32 %v666_v56 }
 0x347   :  { %v672_v45 = vpop.xlane.xlu0 %671 }
 0x348   :  { %2185 = vrcp.f32 %v672_v45 }
 0x34b   :  { %v674_v59 = vpop.xlane.xlu1 %673 }
 0x34f   :  { %v676_v16 = vpop.xlane.xlu0 %675 }
 0x351   :  { %v2180_v11 = vpop.eup %2179 }
 0x352   :  { %v2182_v52 = vpop.eup %2181 }
 0x353   :  { %v678_v54 = vpop.xlane.xlu1 %677  ;;  %v2184_v21 = vpop.eup %2183 }
 0x354   :  { %2187 = vrcp.f32 %v678_v54 }
 0x355   :  { %2189 = vrcp.f32 %v676_v16  ;;  %v2186_v42 = vpop.eup %2185 }
 0x356   :  { %2191 = vrcp.f32 %v674_v59 }
 0x357   :  { %v680_v23 = vpop.xlane.xlu0 %679 }
 0x35b   :  { %v682_v22 = vpop.xlane.xlu1 %681  ;;  %v684_v40 = vpop.xlane.xlu0 %683 }
 0x35f   :  { %v686_v47 = vpop.xlane.xlu1 %685 }
 0x361   :  { %v2188_v51 = vpop.eup %2187 }
 0x362   :  { %v2190_v56 = vpop.eup %2189 }
 0x37c   :  { %v2045_v62 = vpop.f32.mrf.mxu1 }
 0x37d   :  { %v2712_v18 = vmul.f32 %v2182_v52, %v2045_v62  ;;  %v2192_v62 = vpop.eup %2191 }
 0x37e   :  { %v737_v43 = vpop.f32.mrf.mxu1 }
 0x37f   :  { %v2707_v10 = vmul.f32 %v2178_v6, %v737_v43  ;;  %v850_v31 = vmin.f32 %v2712_v18, 0.0  ;;  %vm834_vm3 = vcmp.gt.f32.partialorder %v2712_v18, 0.0 }
 0x380   :  { %v2046_v12 = vpop.f32.mrf.mxu1 }
 0x381   :  { %v848_v17 = vmin.f32 %v2707_v10, 0.0  ;;  %v2710_v60 = vmul.f32 %v2180_v11, %v2046_v12  ;;  %v868_v4 = vmul.f32 1.442695, %v850_v31  ;;  %vm832_vm0 = vcmp.gt.f32.partialorder %v2707_v10, 0.0 }
 0x382   :  { %v740_v57 = vpop.f32.mrf.mxu1 }
 0x383   :  { %v864_v63 = vmul.f32 1.442695, %v848_v17  ;;  %v851_v25 = vmin.f32 %v2710_v60, 0.0  ;;  %v817_v28 = vmul.f32 %v2184_v21, %v740_v57  ;;  %vm835_vm2 = vcmp.gt.f32.partialorder %v2710_v60, 0.0 }
 0x385   :  { %2193 = vpow2.f32 %v864_v63  ;;  %v849_v0 = vmin.f32 %v817_v28, 0.0  ;;  %v870_v36 = vmul.f32 1.442695, %v851_v25  ;;  %vm833_vm1 = vcmp.gt.f32.partialorder %v817_v28, 0.0 }
 0x387   :  { %v866_v37 = vmul.f32 1.442695, %v849_v0 }
 0x389   :  { %2195 = vpow2.f32 %v866_v37  ;;  %v688_v37 = vpop.xlane.xlu0 %687 }
 0x38a   :  { %2197 = vpow2.f32 %v870_v36 }
 0x38b   :  { %2199 = vrcp.f32 %v680_v23 }
 0x38c   :  { %v2049_v39 = vpop.f32.mrf.mxu1  ;;  %2201 = vpow2.f32 %v868_v4 }
 0x38d   :  { %2203 = vrcp.f32 %v682_v22  ;;  %v2721_v45 = vmul.f32 %v2190_v56, %v2049_v39 }
 0x38e   :  { %v753_v29 = vpop.f32.mrf.mxu1  ;;  %2205 = vrcp.f32 %v686_v47 }
 0x38f   :  { %v2716_v19 = vmul.f32 %v2186_v42, %v753_v29  ;;  %2207 = vrcp.f32 %v684_v40  ;;  %v854_v16 = vmin.f32 %v2721_v45, 0.0  ;;  %v690_v29 = vpop.xlane.xlu1 %689  ;;  %vm838_vm7 = vcmp.gt.f32.partialorder %v2721_v45, 0.0 }
 0x390   :  { %v2050_v34 = vpop.f32.mrf.mxu1 }
 0x391   :  { %v852_v32 = vmin.f32 %v2716_v19, 0.0  ;;  %v2719_v59 = vmul.f32 %v2188_v51, %v2050_v34  ;;  %v876_v4 = vmul.f32 1.442695, %v854_v16  ;;  %v692_v16 = vpop.xlane.xlu0 %691  ;;  %vm836_vm4 = vcmp.gt.f32.partialorder %v2716_v19, 0.0 }
 0x392   :  { %v756_v6 = vpop.f32.mrf.mxu1  ;;  %v2194_v43 = vpop.eup %2193 }
 0x393   :  { %v872_v11 = vmul.f32 1.442695, %v852_v32  ;;  %v855_v54 = vmin.f32 %v2719_v59, 0.0  ;;  %v2724_v12 = vmul.f32 %v2192_v62, %v756_v6  ;;  %v1876_v52 = vadd.f32 -1.0, %v2194_v43  ;;  %v694_v6 = vpop.xlane.xlu1 %693 }
 0x394   :  { %vm839_vm6 = vcmp.gt.f32.partialorder %v2719_v59, 0.0 }
 0x395   :  { %2209 = vpow2.f32 %v872_v11  ;;  %v853_v17 = vmin.f32 %v2724_v12, 0.0  ;;  %v878_v63 = vmul.f32 1.442695, %v855_v54  ;;  %v912_v22 = vsel %vm832_vm0, %v2707_v10, %v1876_v52 }
 0x396   :  { %v2196_v57 = vpop.eup %2195  ;;  %vm837_vm5 = vcmp.gt.f32.partialorder %v2724_v12, 0.0 }
 0x397   :  { %v1877_v21 = vadd.f32 -1.0, %v2196_v57  ;;  %v874_v25 = vmul.f32 1.442695, %v853_v17  ;;  %v2198_v0 = vpop.eup %2197 }
 0x398   :  { %v2053_v31 = vpop.f32.mrf.mxu1  ;;  %v2200_v36 = vpop.eup %2199  ;;  %v1879_v56 = vadd.f32 -1.0, %v2198_v0 }
 0x399   :  { %v913_v23 = vsel %vm833_vm1, %v817_v28, %v1877_v21  ;;  %2211 = vpow2.f32 %v874_v25  ;;  %v2202_v42 = vpop.eup %2201 }
 0x39a   :  { %v769_v39 = vpop.f32.mrf.mxu1  ;;  %v928_v47 = vpack.c.bf16 %v913_v23, %v912_v22  ;;  %2213 = vpow2.f32 %v878_v63  ;;  %v2204_v32 = vpop.eup %2203  ;;  %v1878_v10 = vadd.f32 -1.0, %v2202_v42  ;;  %v915_v54 = vsel %vm835_vm2, %v2710_v60, %v1879_v56 }
 0x39b   :  { %v2730_v51 = vmul.f32 %v2200_v36, %v769_v39  ;;  %2215 = vrcp.f32 %v688_v37  ;;  %v2206_v28 = vpop.eup %2205 }
 0x39c   :  { %v2054_v34 = vpop.f32.mrf.mxu1  ;;  %1065 = vmatmul.mubr.bf16.vlgmr.msra.gmra.mxu0 %v928_v47  ;;  %2217 = vpow2.f32 %v876_v4  ;;  %v2208_v52 = vpop.eup %2207  ;;  %v914_v63 = vsel %vm834_vm3, %v2712_v18, %v1878_v10 }
 0x39d   :  { %v856_v40 = vmin.f32 %v2730_v51, 0.0  ;;  %1074 = vmatprep.mubr.bf16.mxu0 %v2487_v48  ;;  %v2735_v43 = vmul.f32 %v2206_v28, %v2054_v34  ;;  %2219 = vrcp.f32 %v690_v29  ;;  %v2741_v57 = vmul.f32 %v2208_v52, %v2053_v31 }
 0x39e   :  { %v772_v62 = vpop.f32.mrf.mxu1  ;;  %2221 = vrcp.f32 %v694_v6  ;;  %v929_v0 = vpack.c.bf16 %v915_v54, %v914_v63  ;;  %vm840_vm9 = vcmp.gt.f32.partialorder %v2730_v51, 0.0 }
 0x39f   :  { %v2737_v11 = vmul.f32 %v2204_v32, %v772_v62  ;;  %v880_v17 = vmul.f32 1.442695, %v856_v40  ;;  %2223 = vrcp.f32 %v692_v16  ;;  %v859_v36 = vmin.f32 %v2735_v43, 0.0 }
 0x3a0   :  { %v858_v60 = vmin.f32 %v2741_v57, 0.0  ;;  %vm843_vm10 = vcmp.gt.f32.partialorder %v2735_v43, 0.0  ;;  %vm842_vm11 = vcmp.gt.f32.partialorder %v2741_v57, 0.0 }
 0x3a1   :  { %v857_v21 = vmin.f32 %v2737_v11, 0.0  ;;  %2225 = vpow2.f32 %v880_v17  ;;  %v886_v23 = vmul.f32 1.442695, %v859_v36  ;;  %vm841_vm8 = vcmp.gt.f32.partialorder %v2737_v11, 0.0 }
 0x3a2   :  { %v2210_v25 = vpop.eup %2209  ;;  %v884_v29 = vmul.f32 1.442695, %v858_v60 }
 0x3a3   :  { %v882_v37 = vmul.f32 1.442695, %v857_v21  ;;  %v1880_v22 = vadd.f32 -1.0, %v2210_v25 }
 0x3a4   :  { %1075 = vmatmul.mubr.bf16.gmra.mxu0 %v929_v0 }
 0x3a5   :  { %2227 = vpow2.f32 %v882_v37  ;;  %1084 = vmatprep.mubr.bf16.mxu0 %v2487_v48  ;;  %v916_v34 = vsel %vm836_vm4, %v2716_v19, %v1880_v22 }
 0x3a6   :  { %v2212_v31 = vpop.eup %2211  ;;  %2229 = vpow2.f32 %v886_v23 }
 0x3a7   :  { %v1881_v39 = vadd.f32 -1.0, %v2212_v31  ;;  %v2214_v42 = vpop.eup %2213  ;;  %2231 = vpow2.f32 %v884_v29 }
 0x3a8   :  { %v2057_v4 = vpop.f32.mrf.mxu1  ;;  %v2216_v18 = vpop.eup %2215  ;;  %v1883_v28 = vadd.f32 -1.0, %v2214_v42 }
 0x3a9   :  { %v917_v56 = vsel %vm837_vm5, %v2724_v12, %v1881_v39  ;;  %v2218_v40 = vpop.eup %2217 }
 0x3aa   :  { %v785_v47 = vpop.f32.mrf.mxu1  ;;  %v930_v62 = vpack.c.bf16 %v917_v56, %v916_v34  ;;  %v2220_v54 = vpop.eup %2219  ;;  %v1882_v16 = vadd.f32 -1.0, %v2218_v40  ;;  %v919_v21 = vsel %vm839_vm6, %v2719_v59, %v1883_v28 }
 0x3ab   :  { %v2752_v32 = vmul.f32 %v2216_v18, %v785_v47  ;;  %v2222_v17 = vpop.eup %2221 }
 0x3ac   :  { %v2058_v10 = vpop.f32.mrf.mxu1  ;;  %1085 = vmatmul.mubr.bf16.gmra.mxu0 %v930_v62  ;;  %v2224_v63 = vpop.eup %2223  ;;  %v918_v60 = vsel %vm838_vm7, %v2721_v45, %v1882_v16 }
 0x3ad   :  { %v860_v6 = vmin.f32 %v2752_v32, 0.0  ;;  %1094 = vmatprep.mubr.bf16.mxu0 %v2487_v48  ;;  %v831_v19 = vmul.f32 %v2222_v17, %v2058_v10  ;;  %v830_v36 = vmul.f32 %v2224_v63, %v2057_v4  ;;  %v931_v31 = vpack.c.bf16 %v919_v21, %v918_v60 }
 0x3ae   :  { %v788_v52 = vpop.f32.mrf.mxu1  ;;  %v2226_v0 = vpop.eup %2225  ;;  %vm844_vm13 = vcmp.gt.f32.partialorder %v2752_v32, 0.0 }
 0x3af   :  { %v829_v12 = vmul.f32 %v2220_v54, %v788_v52  ;;  %v888_v25 = vmul.f32 1.442695, %v860_v6  ;;  %v863_v23 = vmin.f32 %v831_v19, 0.0  ;;  %v862_v18 = vmin.f32 %v830_v36, 0.0 }
 0x3b0   :  { %v1884_v59 = vadd.f32 -1.0, %v2226_v0  ;;  %vm847_vm14 = vcmp.gt.f32.partialorder %v831_v19, 0.0  ;;  %vm846_vm15 = vcmp.gt.f32.partialorder %v830_v36, 0.0 }
 0x3b1   :  { %v861_v37 = vmin.f32 %v829_v12, 0.0  ;;  %2233 = vpow2.f32 %v888_v25  ;;  %v894_v29 = vmul.f32 1.442695, %v863_v23  ;;  %v892_v45 = vmul.f32 1.442695, %v862_v18 }
 0x3b2   :  { %v2228_v22 = vpop.eup %2227  ;;  %v920_v34 = vsel %vm840_vm9, %v2730_v51, %v1884_v59  ;;  %vm845_vm12 = vcmp.gt.f32.partialorder %v829_v12, 0.0 }
 0x3b3   :  { %v890_v39 = vmul.f32 1.442695, %v861_v37  ;;  %v1885_v42 = vadd.f32 -1.0, %v2228_v22  ;;  %v2230_v47 = vpop.eup %2229 }
 0x3b4   :  { %1095 = vmatmul.mubr.bf16.gmra.mxu0 %v931_v31  ;;  %v2232_v56 = vpop.eup %2231  ;;  %v1887_v62 = vadd.f32 -1.0, %v2230_v47 }
 0x3b5   :  { %2235 = vpow2.f32 %v890_v39  ;;  %1104 = vmatprep.mubr.bf16.mxu0 %v2487_v48  ;;  %v921_v4 = vsel %vm841_vm8, %v2737_v11, %v1885_v42  ;;  %v1886_v10 = vadd.f32 -1.0, %v2232_v56 }
 0x3b6   :  { %v932_v40 = vpack.c.bf16 %v921_v4, %v920_v34  ;;  %2237 = vpow2.f32 %v894_v29  ;;  %v923_v28 = vsel %vm843_vm10, %v2735_v43, %v1887_v62 }
 0x3b7   :  { %2239 = vpow2.f32 %v892_v45  ;;  %v922_v6 = vsel %vm842_vm11, %v2741_v57, %v1886_v10 }
 0x3b8   :  { %v933_v51 = vpack.c.bf16 %v923_v28, %v922_v6 }
 0x3bc   :  { %1105 = vmatmul.mubr.bf16.gmra.mxu0 %v932_v40 }
 0x3bd   :  { %1114 = vmatprep.mubr.bf16.mxu0 %v2487_v48 }
 0x3be   :  { %v2234_v11 = vpop.eup %2233 }
 0x3bf   :  { %v1888_v16 = vadd.f32 -1.0, %v2234_v11 }
 0x3c1   :  { %v924_v63 = vsel %vm844_vm13, %v2752_v32, %v1888_v16 }
 0x3c2   :  { %v2236_v54 = vpop.eup %2235 }
 0x3c3   :  { %v1889_v52 = vadd.f32 -1.0, %v2236_v54  ;;  %v2238_v21 = vpop.eup %2237 }
 0x3c4   :  { %1115 = vmatmul.mubr.bf16.gmra.mxu0 %v933_v51  ;;  %v2240_v43 = vpop.eup %2239  ;;  %v1891_v0 = vadd.f32 -1.0, %v2238_v21 }
 0x3c5   :  { %1124 = vmatprep.mubr.bf16.mxu0 %v2487_v48  ;;  %v925_v17 = vsel %vm845_vm12, %v829_v12, %v1889_v52  ;;  %v1890_v57 = vadd.f32 -1.0, %v2240_v43 }
 0x3c6   :  { %v934_v25 = vpack.c.bf16 %v925_v17, %v924_v63  ;;  %v927_v37 = vsel %vm847_vm14, %v831_v19, %v1891_v0 }
 0x3c7   :  { %v926_v60 = vsel %vm846_vm15, %v830_v36, %v1890_v57 }
 0x3c8   :  { %v935_v22 = vpack.c.bf16 %v927_v37, %v926_v60 }
 0x3cc   :  { %1125 = vmatmul.mubr.bf16.gmra.mxu0 %v934_v25 }
 0x3cd   :  { %1134 = vmatprep.mubr.bf16.mxu0 %v2487_v48 }
 0x3d4   :  { %1135 = vmatmul.mubr.bf16.gmra.mxu0 %v935_v22 }
 0x45c   :  { %v1066_v31 = vpop.f32.mrf.mxu0 }
 0x45d   :  { %1242 = vperm.xlu1 %2104, %v1066_v31   ;;  %1161 = vrot.lane.b32.xlu0 %v1066_v31, %s2486_s2 }
 0x45e   :  { %v1068_v12 = vpop.f32.mrf.mxu0 }
 0x460   :  { %v1070_v23 = vpop.f32.mrf.mxu0 }
 0x461   :  { %1246 = vperm.xlu0 %2103, %v1070_v23   ;;  %1163 = vrot.lane.b32.xlu1 %v1070_v23, %s2486_s2 }
 0x462   :  { %v1072_v32 = vpop.f32.mrf.mxu0 }
 0x463   :  { %v2776_v39 = vpack.c.bf16 %v1072_v32, %v1068_v12 }
 0x464   :  { %v1076_v48 = vpop.f32.mrf.mxu0 }
 0x465   :  { %1165 = vrot.lane.b32.xlu1 %v1076_v48, %s2486_s2 }
 0x466   :  { %v1078_v19 = vpop.f32.mrf.mxu0 }
 0x468   :  { %v1080_v42 = vpop.f32.mrf.mxu0 }
 0x469   :  { %1250 = vperm.xlu1 %2104, %v1076_v48   ;;  %1167 = vrot.lane.b32.xlu0 %v1080_v42, %s2486_s2 }
 0x46a   :  { %v1082_v36 = vpop.f32.mrf.mxu0 }
 0x46b   :  { %v2780_v18 = vpack.c.bf16 %v1082_v36, %v1078_v19 }
 0x46c   :  { %v1086_v59 = vpop.f32.mrf.mxu0 }
 0x46d   :  { %1254 = vperm.xlu0 %2103, %v1080_v42   ;;  %1169 = vrot.lane.b32.xlu1 %v1086_v59, %s2486_s2 }
 0x46e   :  { %v1088_v29 = vpop.f32.mrf.mxu0 }
 0x470   :  { %v1090_v4 = vpop.f32.mrf.mxu0 }
 0x471   :  { %1258 = vperm.xlu1 %2104, %v1086_v59   ;;  %1171 = vrot.lane.b32.xlu0 %v1090_v4, %s2486_s2 }
 0x472   :  { %v1092_v47 = vpop.f32.mrf.mxu0 }
 0x473   :  { %v1511_v23 = vpack.c.bf16 %v1092_v47, %v1088_v29 }
 0x474   :  { %v1096_v45 = vpop.f32.mrf.mxu0 }
 0x475   :  { %1173 = vrot.lane.b32.xlu1 %v1096_v45, %s2486_s2 }
 0x476   :  { %v1098_v34 = vpop.f32.mrf.mxu0 }
 0x478   :  { %v1100_v56 = vpop.f32.mrf.mxu0 }
 0x479   :  { %1175 = vrot.lane.b32.xlu0 %v1100_v56, %s2486_s2 }
 0x47a   :  { %v1102_v40 = vpop.f32.mrf.mxu0 }
 0x47b   :  { %v1512_v12 = vpack.c.bf16 %v1102_v40, %v1098_v34 }
 0x47c   :  { %v1106_v62 = vpop.f32.mrf.mxu0 }
 0x47d   :  { %1177 = vrot.lane.b32.xlu1 %v1106_v62, %s2486_s2 }
 0x47e   :  { %v1108_v10 = vpop.f32.mrf.mxu0 }
 0x480   :  { %v1110_v28 = vpop.f32.mrf.mxu0 }
 0x481   :  { %1179 = vrot.lane.b32.xlu0 %v1110_v28, %s2486_s2 }
 0x482   :  { %v1112_v11 = vpop.f32.mrf.mxu0 }
 0x483   :  { %v1513_v31 = vpack.c.bf16 %v1112_v11, %v1108_v10 }
 0x484   :  { %v1116_v6 = vpop.f32.mrf.mxu0 }
 0x485   :  { %1181 = vrot.lane.b32.xlu1 %v1116_v6, %s2486_s2 }
 0x486   :  { %v1118_v54 = vpop.f32.mrf.mxu0 }
 0x488   :  { %v1120_v51 = vpop.f32.mrf.mxu0 }
 0x489   :  { %1183 = vrot.lane.b32.xlu0 %v1120_v51, %s2486_s2 }
 0x48a   :  { %v1122_v52 = vpop.f32.mrf.mxu0 }
 0x48b   :  { %v1514_v22 = vpack.c.bf16 %v1122_v52, %v1118_v54 }
 0x48c   :  { %v1126_v16 = vpop.f32.mrf.mxu0 }
 0x48d   :  { %1185 = vrot.lane.b32.xlu1 %v1126_v16, %s2486_s2 }
 0x48e   :  { %v1128_v17 = vpop.f32.mrf.mxu0 }
 0x490   :  { %v1130_v21 = vpop.f32.mrf.mxu0 }
 0x491   :  { %1187 = vrot.lane.b32.xlu0 %v1130_v21, %s2486_s2 }
 0x492   :  { %v1132_v63 = vpop.f32.mrf.mxu0 }
 0x493   :  { %v1515_v60 = vpack.c.bf16 %v1132_v63, %v1128_v17 }
 0x494   :  { %v1136_v43 = vpop.f32.mrf.mxu0 }
 0x495   :  { %1189 = vrot.lane.b32.xlu1 %v1136_v43, %s2486_s2 }
 0x496   :  { %v1138_v25 = vpop.f32.mrf.mxu0 }
 0x498   :  { %v1140_v0 = vpop.f32.mrf.mxu0 }
 0x499   :  { %1266 = vperm.xlu1 %2104, %v1096_v45   ;;  %1191 = vrot.lane.b32.xlu0 %v1140_v0, %s2486_s2 }
 0x49a   :  { %v1142_v57 = vpop.f32.mrf.mxu0 }
 0x49b   :  { %v1516_v37 = vpack.c.bf16 %v1142_v57, %v1138_v25 }
 0x49d   :  { %1274 = vperm.xlu1 %2104, %v1106_v62   ;;  %1262 = vperm.xlu0 %2103, %v1090_v4  }
 0x49e   :  { %2059 = vmatprep.subr.bf16.mxu1 %v1516_v37 }
 0x49f   :  { %2060 = vmatpush3.bf16.msra.mxu1 %v1516_v37 }
 0x4a0   :  { %2061 = vmatprep.subr.bf16.mxu1 %v1515_v60 }
 0x4a1   :  { %1282 = vperm.xlu1 %2104, %v1116_v6   ;;  %1270 = vperm.xlu0 %2103, %v1100_v56  }
 0x4a3   :  { %2062 = vmatpush3.bf16.msra.mxu1 %v1515_v60 }
 0x4a4   :  { %2063 = vmatprep.subr.bf16.mxu1 %v1514_v22 }
 0x4a5   :  { %1290 = vperm.xlu1 %2104, %v1126_v16   ;;  %1278 = vperm.xlu0 %2103, %v1110_v28  }
 0x4a7   :  { %2064 = vmatpush3.bf16.msra.mxu1 %v1514_v22 }
 0x4a8   :  { %2065 = vmatprep.subr.bf16.mxu1 %v1513_v31 }
 0x4a9   :  { %1298 = vperm.xlu1 %2104, %v1136_v43   ;;  %1286 = vperm.xlu0 %2103, %v1120_v51  }
 0x4ab   :  { %2066 = vmatpush3.bf16.msra.mxu1 %v1513_v31 }
 0x4ac   :  { %2067 = vmatprep.subr.bf16.mxu1 %v1512_v12 }
 0x4ad   :  { %1294 = vperm.xlu0 %2103, %v1130_v21  }
 0x4af   :  { %2068 = vmatpush3.bf16.msra.mxu1 %v1512_v12 }
 0x4b0   :  { %2069 = vmatprep.subr.bf16.mxu1 %v1511_v23 }
 0x4b1   :  { %1302 = vperm.xlu0 %2103, %v1140_v0  }
 0x4b3   :  { %2070 = vmatpush3.bf16.msra.mxu1 %v1511_v23 }
 0x4b4   :  { %2071 = vmatprep.subr.bf16.mxu1 %v2780_v18 }
 0x4b7   :  { %2072 = vmatpush3.bf16.msra.mxu1 %v2780_v18 }
 0x4b8   :  { %2073 = vmatprep.subr.bf16.mxu1 %v2776_v39 }
 0x4bb   :  { %2074 = vmatpush3.bf16.msra.mxu1 %v2776_v39 }
 0x4cf   :  { %v1162_v32 = vpop.permute.xlu0 %1161 }
 0x4d2   :  { %1209 = vxpose.xlu1.b32.start [1/16] (narrow) %v1162_v32, 8 }
 0x4d8   :  { %v1243_v48 = vpop.permute.xlu1 %1242 }
 0x4dc   :  { %v1164_v19 = vpop.permute.xlu1 %1163  ;;  %v1247_v42 = vpop.permute.xlu0 %1246 }
 0x4dd   :  { %1210 = vxpose.xlu1.b32.cont [2/16] (narrow) %v1164_v19, 8 }
 0x4e0   :  { %v1166_v36 = vpop.permute.xlu1 %1165  ;;  %v1168_v59 = vpop.permute.xlu0 %1167 }
 0x4e1   :  { %1211 = vxpose.xlu1.b32.cont [3/16] (narrow) %v1166_v36, 8 }
 0x4e4   :  { %v1251_v29 = vpop.permute.xlu1 %1250 }
 0x4e5   :  { %1212 = vxpose.xlu1.b32.cont [4/16] (narrow) %v1168_v59, 8 }
 0x4e8   :  { %v1255_v4 = vpop.permute.xlu0 %1254  ;;  %v1170_v47 = vpop.permute.xlu1 %1169 }
 0x4e9   :  { %1213 = vxpose.xlu1.b32.cont [5/16] (narrow) %v1170_v47, 8 }
 0x4ec   :  { %v1259_v45 = vpop.permute.xlu1 %1258  ;;  %v1172_v18 = vpop.permute.xlu0 %1171 }
 0x4ed   :  { %1214 = vxpose.xlu1.b32.cont [6/16] (narrow) %v1172_v18, 8 }
 0x4f0   :  { %v1174_v34 = vpop.permute.xlu1 %1173  ;;  %v1176_v39 = vpop.permute.xlu0 %1175 }
 0x4f1   :  { %1215 = vxpose.xlu1.b32.cont [7/16] (narrow) %v1174_v34, 8 }
 0x4f4   :  { %v1178_v56 = vpop.permute.xlu1 %1177  ;;  %v1180_v40 = vpop.permute.xlu0 %1179 }
 0x4f5   :  { %1216 = vxpose.xlu1.b32.cont [8/16] (narrow) %v1176_v39, 8 }
 0x4f8   :  { %v1182_v62 = vpop.permute.xlu1 %1181 }
 0x4f9   :  { %1217 = vxpose.xlu1.b32.cont [9/16] (narrow) %v1178_v56, 8 }
 0x4fb   :  { %v1184_v10 = vpop.permute.xlu0 %1183 }
 0x4fd   :  { %1218 = vxpose.xlu1.b32.cont [10/16] (narrow) %v1180_v40, 8 }
 0x4ff   :  { %v1186_v28 = vpop.permute.xlu1 %1185 }
 0x501   :  { %1219 = vxpose.xlu1.b32.cont [11/16] (narrow) %v1182_v62, 8 }
 0x503   :  { %v1188_v11 = vpop.permute.xlu0 %1187 }
 0x505   :  { %1220 = vxpose.xlu1.b32.cont [12/16] (narrow) %v1184_v10, 8 }
 0x507   :  { %v1190_v6 = vpop.permute.xlu1 %1189 }
 0x509   :  { %1221 = vxpose.xlu1.b32.cont [13/16] (narrow) %v1186_v28, 8 }
 0x50b   :  { %v1192_v54 = vpop.permute.xlu0 %1191 }
 0x50d   :  { %1222 = vxpose.xlu1.b32.cont [14/16] (narrow) %v1188_v11, 8 }
 0x511   :  { %1223 = vxpose.xlu1.b32.cont [15/16] (narrow) %v1190_v6, 8 }
 0x514   :  { %v1267_v51 = vpop.permute.xlu1 %1266 }
 0x515   :  { %1224 = vxpose.xlu1.b32.end [16/16] (narrow) %v1192_v54, 8 }
 0x518   :  { %v1275_v52 = vpop.permute.xlu1 %1274 }
 0x51c   :  { %v1283_v16 = vpop.permute.xlu1 %1282 }
 0x520   :  { %v2798_v17 = vpop.permute.xlu1 %1290 }
 0x524   :  { %v2800_v21 = vpop.permute.xlu1 %1298 }
 0x555   :  { %v1225_v63 = vpop.trf.xlu1 }
 0x556   :  { %v2804_v43 = vrot.slane %v1225_v63, %v469_v5 }
 0x558   :  { %v1309_v25 = vadd.f32 %v2804_v43, %v1243_v48  ;;  %v1310_v0 = vadd.f32 %v2804_v43, %v1247_v42  ;;  %v1311_v60 = vadd.f32 %v2804_v43, %v1251_v29  ;;  %v1312_v3 = vadd.f32 %v2804_v43, %v1255_v4 }
 0x559   :  { %v1313_v19 = vadd.f32 %v2804_v43, %v1259_v45  ;;  %v1315_v47 = vadd.f32 %v2804_v43, %v1267_v51  ;;  %v1317_v40 = vadd.f32 %v2804_v43, %v1275_v52  ;;  %v1319_v54 = vadd.f32 %v2804_v43, %v1283_v16 }
 0x55a   :  { %vm1325_vm0 = vcmp.gt.f32.partialorder %v1309_v25, 0.0  ;;  %v1341_v57 = vmul.f32 0.2, %v1309_v25  ;;  %v1342_v37 = vmul.f32 0.2, %v1310_v0  ;;  %vm1326_vm1 = vcmp.gt.f32.partialorder %v1310_v0, 0.0 }
 0x55b   :  { %v1343_v23 = vmul.f32 0.2, %v1311_v60  ;;  %vm1327_vm2 = vcmp.gt.f32.partialorder %v1311_v60, 0.0  ;;  %v1344_v48 = vmul.f32 0.2, %v1312_v3  ;;  %vm1328_vm3 = vcmp.gt.f32.partialorder %v1312_v3, 0.0 }
 0x55c   :  { %v1357_v22 = vsel %vm1325_vm0, %v1309_v25, %v1341_v57  ;;  %v1358_v12 = vsel %vm1326_vm1, %v1310_v0, %v1342_v37  ;;  %v1345_v59 = vmul.f32 0.2, %v1313_v19  ;;  %vm1329_vm4 = vcmp.gt.f32.partialorder %v1313_v19, 0.0 }
 0x55d   :  { %v2811_v31 = vadd.f32 %v1910_v15, %v1357_v22  ;;  %v2817_v5 = vadd.f32 %v1911_v24, %v1358_v12  ;;  %v1359_v32 = vsel %vm1327_vm2, %v1311_v60, %v1343_v23  ;;  %v1263_v15 = vpop.permute.xlu0 %1262  ;;  %v1360_v36 = vsel %vm1328_vm3, %v1312_v3, %v1344_v48 }
 0x55e   :  { %v2823_v42 = vadd.f32 %v1914_v30, %v1359_v32  ;;  %v1314_v29 = vadd.f32 %v2804_v43, %v1263_v15  ;;  %v2829_v9 = vadd.f32 %v1915_v35, %v1360_v36  ;;  %v1361_v24 = vsel %vm1329_vm4, %v1313_v19, %v1345_v59 }
 0x55f   :  { %1389 = vmax.xlane.f32.xlu0 %v2811_v31  ;;  %v2835_v45 = vadd.f32 %v1918_v41, %v1361_v24  ;;  %v1347_v34 = vmul.f32 0.2, %v1315_v47  ;;  %vm1331_vm6 = vcmp.gt.f32.partialorder %v1315_v47, 0.0  ;;  %v1349_v28 = vmul.f32 0.2, %v1317_v40 }
 0x560   :  { %v1346_v4 = vmul.f32 0.2, %v1314_v29  ;;  %vm1330_vm5 = vcmp.gt.f32.partialorder %v1314_v29, 0.0  ;;  %vm1333_vm8 = vcmp.gt.f32.partialorder %v1317_v40, 0.0  ;;  %v1351_v63 = vmul.f32 0.2, %v1319_v54 }
 0x561   :  { %v1271_v30 = vpop.permute.xlu0 %1270  ;;  %v1363_v35 = vsel %vm1331_vm6, %v1315_v47, %v1347_v34  ;;  %vm1335_vm10 = vcmp.gt.f32.partialorder %v1319_v54, 0.0  ;;  %v1321_v0 = vadd.f32 %v2804_v43, %v2798_v17  ;;  %v1323_v12 = vadd.f32 %v2804_v43, %v2800_v21 }
 0x562   :  { %v1362_v18 = vsel %vm1330_vm5, %v1314_v29, %v1346_v4  ;;  %v1316_v39 = vadd.f32 %v2804_v43, %v1271_v30  ;;  %v2847_v62 = vadd.f32 %v1922_v53, %v1363_v35 }
 0x563   :  { %1391 = vmax.xlane.f32.xlu0 %v2817_v5  ;;  %v2841_v27 = vadd.f32 %v1919_v46, %v1362_v18  ;;  %v1365_v46 = vsel %vm1333_vm8, %v1317_v40, %v1349_v28  ;;  %v1353_v60 = vmul.f32 0.2, %v1321_v0  ;;  %vm1337_vm12 = vcmp.gt.f32.partialorder %v1321_v0, 0.0 }
 0x564   :  { %v1348_v56 = vmul.f32 0.2, %v1316_v39  ;;  %vm1332_vm7 = vcmp.gt.f32.partialorder %v1316_v39, 0.0  ;;  %v2859_v51 = vadd.f32 %v1926_v2, %v1365_v46  ;;  %v1355_v32 = vmul.f32 0.2, %v1323_v12 }
 0x565   :  { %v1279_v41 = vpop.permute.xlu0 %1278  ;;  %vm1339_vm14 = vcmp.gt.f32.partialorder %v1323_v12, 0.0 }
 0x566   :  { %v1364_v10 = vsel %vm1332_vm7, %v1316_v39, %v1348_v56  ;;  %v1318_v11 = vadd.f32 %v2804_v43, %v1279_v41 }
 0x567   :  { %1393 = vmax.xlane.f32.xlu0 %v2823_v42  ;;  %v2853_v38 = vadd.f32 %v1923_v58, %v1364_v10  ;;  %v1367_v58 = vsel %vm1335_vm10, %v1319_v54, %v1351_v63 }
 0x568   :  { %v1350_v6 = vmul.f32 0.2, %v1318_v11  ;;  %vm1334_vm9 = vcmp.gt.f32.partialorder %v1318_v11, 0.0  ;;  %v2872_v57 = vadd.f32 %v1930_v14, %v1367_v58 }
 0x569   :  { %v1287_v53 = vpop.permute.xlu0 %1286 }
 0x56a   :  { %v1366_v52 = vsel %vm1334_vm9, %v1318_v11, %v1350_v6  ;;  %v1320_v25 = vadd.f32 %v2804_v43, %v1287_v53 }
 0x56b   :  { %1395 = vmax.xlane.f32.xlu0 %v2829_v9  ;;  %v2865_v49 = vadd.f32 %v1927_v13, %v1366_v52  ;;  %v1369_v13 = vsel %vm1337_vm12, %v1321_v0, %v1353_v60 }
 0x56c   :  { %v1352_v16 = vmul.f32 0.2, %v1320_v25  ;;  %vm1336_vm11 = vcmp.gt.f32.partialorder %v1320_v25, 0.0  ;;  %v2885_v23 = vadd.f32 %v1934_v33, %v1369_v13 }
 0x56d   :  { %v1295_v2 = vpop.permute.xlu0 %1294 }
 0x56e   :  { %v1368_v37 = vsel %vm1336_vm11, %v1320_v25, %v1352_v16  ;;  %v1322_v22 = vadd.f32 %v2804_v43, %v1295_v2 }
 0x56f   :  { %1397 = vmax.xlane.f32.xlu0 %v2835_v45  ;;  %v2878_v61 = vadd.f32 %v1931_v20, %v1368_v37  ;;  %v1371_v20 = vsel %vm1339_vm14, %v1323_v12, %v1355_v32 }
 0x570   :  { %v1354_v17 = vmul.f32 0.2, %v1322_v22  ;;  %vm1338_vm13 = vcmp.gt.f32.partialorder %v1322_v22, 0.0  ;;  %v2896_v33 = vadd.f32 %v1938_v55, %v1371_v20 }
 0x571   :  { %v1303_v14 = vpop.permute.xlu0 %1302 }
 0x572   :  { %v1370_v3 = vsel %vm1338_vm13, %v1322_v22, %v1354_v17  ;;  %v1324_v48 = vadd.f32 %v2804_v43, %v1303_v14 }
 0x573   :  { %1399 = vmax.xlane.f32.xlu0 %v2841_v27  ;;  %v2891_v8 = vadd.f32 %v1935_v44, %v1370_v3 }
 0x574   :  { %v1356_v21 = vmul.f32 0.2, %v1324_v48  ;;  %vm1340_vm15 = vcmp.gt.f32.partialorder %v1324_v48, 0.0 }
 0x576   :  { %v1372_v19 = vsel %vm1340_vm15, %v1324_v48, %v1356_v21 }
 0x577   :  { %1401 = vmax.xlane.f32.xlu0 %v2847_v62  ;;  %v2901_v43 = vadd.f32 %v1939_v7, %v1372_v19 }
 0x57b   :  { %1403 = vmax.xlane.f32.xlu0 %v2853_v38 }
 0x57f   :  { %1405 = vmax.xlane.f32.xlu0 %v2859_v51 }
 0x583   :  { %1407 = vmax.xlane.f32.xlu0 %v2865_v49 }
 0x587   :  { %1409 = vmax.xlane.f32.xlu0 %v2872_v57 }
 0x58b   :  { %1411 = vmax.xlane.f32.xlu0 %v2878_v61 }
 0x58f   :  { %1413 = vmax.xlane.f32.xlu0 %v2885_v23 }
 0x593   :  { %1415 = vmax.xlane.f32.xlu0 %v2891_v8 }
 0x597   :  { %1417 = vmax.xlane.f32.xlu0 %v2896_v33 }
 0x59b   :  { %1419 = vmax.xlane.f32.xlu0 %v2901_v43 }
 0x5e8   :  { %v1390_v26 = vpop.xlane.xlu0 %1389 }
 0x5e9   :  { %v1421_v44 = vsub.f32 %v2811_v31, %v1390_v26 }
 0x5eb   :  { %v1437_v15 = vmul.f32 1.442695, %v1421_v44 }
 0x5ec   :  { %v1392_v36 = vpop.xlane.xlu0 %1391 }
 0x5ed   :  { %2241 = vpow2.f32 %v1437_v15  ;;  %v1422_v59 = vsub.f32 %v2817_v5, %v1392_v36 }
 0x5ef   :  { %v1439_v29 = vmul.f32 1.442695, %v1422_v59 }
 0x5f0   :  { %v1394_v55 = vpop.xlane.xlu0 %1393 }
 0x5f1   :  { %2243 = vpow2.f32 %v1439_v29  ;;  %v1423_v24 = vsub.f32 %v2823_v42, %v1394_v55 }
 0x5f3   :  { %v1441_v4 = vmul.f32 1.442695, %v1423_v24 }
 0x5f4   :  { %v1396_v47 = vpop.xlane.xlu0 %1395 }
 0x5f5   :  { %2245 = vpow2.f32 %v1441_v4  ;;  %v1424_v50 = vsub.f32 %v2829_v9, %v1396_v47 }
 0x5f7   :  { %v1443_v7 = vmul.f32 1.442695, %v1424_v50 }
 0x5f8   :  { %v1398_v30 = vpop.xlane.xlu0 %1397 }
 0x5f9   :  { %2247 = vpow2.f32 %v1443_v7  ;;  %v1425_v31 = vsub.f32 %v2835_v45, %v1398_v30 }
 0x5fa   :  { %v2242_v18 = vpop.eup %2241 }
 0x5fb   :  { %v1445_v34 = vmul.f32 1.442695, %v1425_v31  ;;  %1469 = vadd.xlane.f32.xlu0 %v2242_v18 }
 0x5fc   :  { %v1400_v39 = vpop.xlane.xlu0 %1399 }
 0x5fd   :  { %2249 = vpow2.f32 %v1445_v34  ;;  %v1426_v5 = vsub.f32 %v2841_v27, %v1400_v39  ;;  %v2921_v39 = vand.u32 127, %v467_v1 }
 0x5fe   :  { %v2244_v35 = vpop.eup %2243 }
 0x5ff   :  { %v1447_v56 = vmul.f32 1.442695, %v1426_v5  ;;  %1471 = vadd.xlane.f32.xlu0 %v2244_v35  ;;  %v1501_v42 = vpack.c.bf16 %v2244_v35, %v2242_v18  ;;  %vm1648_vm0 = vcmp.lt.s32.totalorder %v2921_v39, 8 }
 0x600   :  { %v1402_v40 = vpop.xlane.xlu0 %1401 }
 0x601   :  { %2251 = vpow2.f32 %v1447_v56  ;;  %v1427_v9 = vsub.f32 %v2847_v62, %v1402_v40  ;;  %2075 = vmatprep.mubr.bf16.mxu1 %v1501_v42 }
 0x602   :  { %v2246_v41 = vpop.eup %2245 }
 0x603   :  { %v1449_v10 = vmul.f32 1.442695, %v1427_v9  ;;  %1473 = vadd.xlane.f32.xlu1 %v2246_v41 }
 0x604   :  { %v1404_v45 = vpop.xlane.xlu0 %1403 }
 0x605   :  { %2253 = vpow2.f32 %v1449_v10  ;;  %v1428_v28 = vsub.f32 %v2853_v38, %v1404_v45 }
 0x606   :  { %v2248_v11 = vpop.eup %2247 }
 0x607   :  { %v1451_v46 = vmul.f32 1.442695, %v1428_v28  ;;  %1475 = vadd.xlane.f32.xlu0 %v2248_v11  ;;  %v1502_v27 = vpack.c.bf16 %v2248_v11, %v2246_v41 }
 0x608   :  { %v1406_v6 = vpop.xlane.xlu0 %1405 }
 0x609   :  { %2255 = vpow2.f32 %v1451_v46  ;;  %v1429_v54 = vsub.f32 %v2859_v51, %v1406_v6  ;;  %2076 = vmatmul.mubr.bf16.vlgmr.msra.gmra.mxu1 %v1502_v27 }
 0x60a   :  { %v2250_v53 = vpop.eup %2249 }
 0x60b   :  { %v1453_v52 = vmul.f32 1.442695, %v1429_v54  ;;  %1477 = vadd.xlane.f32.xlu0 %v2250_v53 }
 0x60c   :  { %v1408_v62 = vpop.xlane.xlu0 %1407 }
 0x60d   :  { %2257 = vpow2.f32 %v1453_v52  ;;  %v1430_v63 = vsub.f32 %v2865_v49, %v1408_v62 }
 0x60e   :  { %v2252_v25 = vpop.eup %2251 }
 0x60f   :  { %v1455_v58 = vmul.f32 1.442695, %v1430_v63  ;;  %1479 = vadd.xlane.f32.xlu0 %v2252_v25  ;;  %v1503_v38 = vpack.c.bf16 %v2252_v25, %v2250_v53 }
 0x610   :  { %v1410_v16 = vpop.xlane.xlu0 %1409 }
 0x611   :  { %2259 = vpow2.f32 %v1455_v58  ;;  %v1431_v0 = vsub.f32 %v2872_v57, %v1410_v16  ;;  %2079 = vmatprep.mubr.bf16.mxu1 %v1503_v38 }
 0x612   :  { %v2254_v2 = vpop.eup %2253 }
 0x613   :  { %v1457_v37 = vmul.f32 1.442695, %v1431_v0  ;;  %1481 = vadd.xlane.f32.xlu0 %v2254_v2 }
 0x614   :  { %v1412_v51 = vpop.xlane.xlu0 %1411 }
 0x615   :  { %2261 = vpow2.f32 %v1457_v37  ;;  %v1432_v60 = vsub.f32 %v2878_v61, %v1412_v51 }
 0x616   :  { %v2256_v22 = vpop.eup %2255 }
 0x617   :  { %v1459_v13 = vmul.f32 1.442695, %v1432_v60  ;;  %1483 = vadd.xlane.f32.xlu0 %v2256_v22  ;;  %v1504_v49 = vpack.c.bf16 %v2256_v22, %v2254_v2 }
 0x618   :  { %v1414_v17 = vpop.xlane.xlu0 %1413 }
 0x619   :  { %2263 = vpow2.f32 %v1459_v13  ;;  %v1433_v12 = vsub.f32 %v2885_v23, %v1414_v17  ;;  %2080 = vmatmul.mubr.bf16.gmra.mxu1 %v1504_v49 }
 0x61a   :  { %v2258_v14 = vpop.eup %2257 }
 0x61b   :  { %v1461_v3 = vmul.f32 1.442695, %v1433_v12  ;;  %1485 = vadd.xlane.f32.xlu0 %v2258_v14 }
 0x61c   :  { %v1416_v57 = vpop.xlane.xlu0 %1415 }
 0x61d   :  { %2265 = vpow2.f32 %v1461_v3  ;;  %v1434_v32 = vsub.f32 %v2891_v8, %v1416_v57 }
 0x61e   :  { %v2260_v48 = vpop.eup %2259 }
 0x61f   :  { %v1463_v20 = vmul.f32 1.442695, %v1434_v32  ;;  %1487 = vadd.xlane.f32.xlu0 %v2260_v48  ;;  %v1505_v61 = vpack.c.bf16 %v2260_v48, %v2258_v14 }
 0x620   :  { %v1418_v21 = vpop.xlane.xlu0 %1417 }
 0x621   :  { %2267 = vpow2.f32 %v1463_v20  ;;  %v1435_v19 = vsub.f32 %v2896_v33, %v1418_v21  ;;  %2083 = vmatprep.mubr.bf16.mxu1 %v1505_v61 }
 0x622   :  { %v2262_v26 = vpop.eup %2261 }
 0x623   :  { %v1465_v44 = vmul.f32 1.442695, %v1435_v19  ;;  %1489 = vadd.xlane.f32.xlu0 %v2262_v26 }
 0x624   :  { %v1420_v23 = vpop.xlane.xlu0 %1419 }
 0x625   :  { %2269 = vpow2.f32 %v1465_v44  ;;  %v1436_v15 = vsub.f32 %v2901_v43, %v1420_v23 }
 0x626   :  { %v2264_v36 = vpop.eup %2263 }
 0x627   :  { %v1467_v59 = vmul.f32 1.442695, %v1436_v15  ;;  %1491 = vadd.xlane.f32.xlu0 %v2264_v36  ;;  %v1506_v8 = vpack.c.bf16 %v2264_v36, %v2262_v26 }
 0x629   :  { %2271 = vpow2.f32 %v1467_v59  ;;  %2084 = vmatmul.mubr.bf16.gmra.mxu1 %v1506_v8 }
 0x62a   :  { %v2266_v29 = vpop.eup %2265 }
 0x62b   :  { %1493 = vadd.xlane.f32.xlu0 %v2266_v29 }
 0x62e   :  { %v2268_v55 = vpop.eup %2267 }
 0x62f   :  { %1495 = vadd.xlane.f32.xlu1 %v2268_v55  ;;  %v1507_v24 = vpack.c.bf16 %v2268_v55, %v2266_v29 }
 0x631   :  { %2087 = vmatprep.mubr.bf16.mxu1 %v1507_v24 }
 0x632   :  { %v2270_v33 = vpop.eup %2269 }
 0x633   :  { %1497 = vadd.xlane.f32.xlu0 %v2270_v33 }
 0x636   :  { %v2272_v4 = vpop.eup %2271 }
 0x637   :  { %1499 = vadd.xlane.f32.xlu1 %v2272_v4  ;;  %v1508_v47 = vpack.c.bf16 %v2272_v4, %v2270_v33 }
 0x639   :  { %2088 = vmatmul.mubr.bf16.gmra.mxu1 %v1508_v47 }
 0x684   :  { %v1470_v50 = vpop.xlane.xlu0 %1469 }
 0x688   :  { %v1472_v43 = vpop.xlane.xlu0 %1471 }
 0x68c   :  { %v1474_v31 = vpop.xlane.xlu1 %1473 }
 0x68d   :  { %2273 = vrcp.f32 %v1474_v31 }
 0x68e   :  { %2275 = vrcp.f32 %v1470_v50 }
 0x690   :  { %v1476_v7 = vpop.xlane.xlu0 %1475 }
 0x691   :  { %2277 = vrcp.f32 %v1476_v7 }
 0x692   :  { %2279 = vrcp.f32 %v1472_v43 }
 0x694   :  { %v1478_v30 = vpop.xlane.xlu0 %1477 }
 0x698   :  { %v1480_v18 = vpop.xlane.xlu0 %1479 }
 0x69a   :  { %v2274_v35 = vpop.eup %2273 }
 0x69b   :  { %v2276_v40 = vpop.eup %2275 }
 0x69c   :  { %v1482_v34 = vpop.xlane.xlu0 %1481 }
 0x69d   :  { %2281 = vrcp.f32 %v1482_v34 }
 0x69e   :  { %v2278_v28 = vpop.eup %2277  ;;  %2283 = vrcp.f32 %v1478_v30 }
 0x69f   :  { %v2280_v46 = vpop.eup %2279 }
 0x6a0   :  { %v1484_v5 = vpop.xlane.xlu0 %1483 }
 0x6a1   :  { %2285 = vrcp.f32 %v1484_v5 }
 0x6a2   :  { %2287 = vrcp.f32 %v1480_v18 }
 0x6a4   :  { %v1486_v9 = vpop.xlane.xlu0 %1485 }
 0x6a8   :  { %v1488_v52 = vpop.xlane.xlu0 %1487 }
 0x6aa   :  { %v2282_v25 = vpop.eup %2281 }
 0x6ab   :  { %v2284_v16 = vpop.eup %2283 }
 0x6ac   :  { %v1490_v63 = vpop.xlane.xlu0 %1489 }
 0x6ad   :  { %2289 = vrcp.f32 %v1490_v63 }
 0x6ae   :  { %v2286_v51 = vpop.eup %2285  ;;  %2291 = vrcp.f32 %v1486_v9 }
 0x6af   :  { %v2288_v49 = vpop.eup %2287 }
 0x6b0   :  { %v1492_v60 = vpop.xlane.xlu0 %1491 }
 0x6b1   :  { %2293 = vrcp.f32 %v1492_v60 }
 0x6b2   :  { %2295 = vrcp.f32 %v1488_v52 }
 0x6b4   :  { %v1494_v48 = vpop.xlane.xlu0 %1493 }
 0x6b5   :  { %2297 = vrcp.f32 %v1494_v48 }
 0x6b8   :  { %v1496_v26 = vpop.xlane.xlu1 %1495 }
 0x6ba   :  { %v2290_v32 = vpop.eup %2289 }
 0x6bb   :  { %v2292_v21 = vpop.eup %2291 }
 0x6bc   :  { %v1498_v36 = vpop.xlane.xlu0 %1497 }
 0x6bd   :  { %2299 = vrcp.f32 %v1498_v36 }
 0x6be   :  { %v2294_v15 = vpop.eup %2293  ;;  %2301 = vrcp.f32 %v1496_v26 }
 0x6bf   :  { %v2296_v29 = vpop.eup %2295 }
 0x6c0   :  { %v1500_v47 = vpop.xlane.xlu1 %1499 }
 0x6c1   :  { %2303 = vrcp.f32 %v1500_v47 }
 0x6c2   :  { %v2298_v7 = vpop.eup %2297 }
 0x6c9   :  { %v2077_v56 = vpop.f32.mrf.mxu1 }
 0x6ca   :  { %v1632_v42 = vmul.f32 %v2274_v35, %v2077_v56  ;;  %v2300_v18 = vpop.eup %2299 }
 0x6cb   :  { %v1551_v41 = vpop.f32.mrf.mxu1  ;;  %v2302_v56 = vpop.eup %2301 }
 0x6cc   :  { %v1630_v10 = vmul.f32 %v2276_v40, %v1551_v41  ;;  %v2926_v45 = vsel %vm1648_vm0, %v1632_v42, -9e+15 }
 0x6cd   :  { %1669 = vmax.xlane.f32.xlu0 %v2926_v45  ;;  %v2078_v1 = vpop.f32.mrf.mxu1 }
 0x6ce   :  { %v1633_v11 = vmul.f32 %v2278_v28, %v2078_v1  ;;  %v2931_v54 = vsel %vm1648_vm0, %v1630_v10, -9e+15  ;;  %v2304_v9 = vpop.eup %2303 }
 0x6cf   :  { %v1554_v27 = vpop.f32.mrf.mxu1 }
 0x6d0   :  { %v1631_v6 = vmul.f32 %v2280_v46, %v1554_v27  ;;  %v2935_v53 = vsel %vm1648_vm0, %v1633_v11, -9e+15 }
 0x6d1   :  { %1665 = vmax.xlane.f32.xlu0 %v2931_v54  ;;  %1671 = vmax.xlane.f32.xlu1 %v2935_v53 }
 0x6d2   :  { %v2941_v62 = vsel %vm1648_vm0, %v1631_v6, -9e+15 }
 0x6d5   :  { %1667 = vmax.xlane.f32.xlu1 %v2941_v62 }
 0x6d9   :  { %v2081_v58 = vpop.f32.mrf.mxu1 }
 0x6da   :  { %v1636_v38 = vmul.f32 %v2282_v25, %v2081_v58 }
 0x6db   :  { %v1567_v0 = vpop.f32.mrf.mxu1 }
 0x6dc   :  { %v1634_v2 = vmul.f32 %v2284_v16, %v1567_v0  ;;  %v2946_v37 = vsel %vm1648_vm0, %v1636_v38, -9e+15 }
 0x6dd   :  { %1677 = vmax.xlane.f32.xlu0 %v2946_v37  ;;  %v2082_v22 = vpop.f32.mrf.mxu1 }
 0x6de   :  { %v1637_v13 = vmul.f32 %v2286_v51, %v2082_v22  ;;  %v2951_v14 = vsel %vm1648_vm0, %v1634_v2, -9e+15 }
 0x6df   :  { %v1570_v17 = vpop.f32.mrf.mxu1 }
 0x6e0   :  { %v1635_v12 = vmul.f32 %v2288_v49, %v1570_v17  ;;  %v2955_v3 = vsel %vm1648_vm0, %v1637_v13, -9e+15 }
 0x6e1   :  { %1673 = vmax.xlane.f32.xlu0 %v2951_v14  ;;  %1679 = vmax.xlane.f32.xlu1 %v2955_v3 }
 0x6e2   :  { %v2961_v57 = vsel %vm1648_vm0, %v1635_v12, -9e+15 }
 0x6e5   :  { %1675 = vmax.xlane.f32.xlu1 %v2961_v57 }
 0x6e9   :  { %v2085_v20 = vpop.f32.mrf.mxu1 }
 0x6ea   :  { %v1640_v61 = vmul.f32 %v2290_v32, %v2085_v20 }
 0x6eb   :  { %v1583_v19 = vpop.f32.mrf.mxu1 }
 0x6ec   :  { %v1638_v44 = vmul.f32 %v2292_v21, %v1583_v19  ;;  %v2966_v23 = vsel %vm1648_vm0, %v1640_v61, -9e+15 }
 0x6ed   :  { %1685 = vmax.xlane.f32.xlu0 %v2966_v23  ;;  %v2086_v59 = vpop.f32.mrf.mxu1 }
 0x6ee   :  { %v1641_v8 = vmul.f32 %v2294_v15, %v2086_v59  ;;  %v2971_v33 = vsel %vm1648_vm0, %v1638_v44, -9e+15 }
 0x6ef   :  { %v1586_v55 = vpop.f32.mrf.mxu1 }
 0x6f0   :  { %v1639_v24 = vmul.f32 %v2296_v29, %v1586_v55  ;;  %v2975_v4 = vsel %vm1648_vm0, %v1641_v8, -9e+15 }
 0x6f1   :  { %1681 = vmax.xlane.f32.xlu0 %v2971_v33  ;;  %1687 = vmax.xlane.f32.xlu1 %v2975_v4 }
 0x6f2   :  { %v2981_v50 = vsel %vm1648_vm0, %v1639_v24, -9e+15 }
 0x6f5   :  { %1683 = vmax.xlane.f32.xlu1 %v2981_v50 }
 0x6f9   :  { %v2089_v43 = vpop.f32.mrf.mxu1 }
 0x6fa   :  { %v1644_v5 = vmul.f32 %v2300_v18, %v2089_v43 }
 0x6fb   :  { %v1599_v30 = vpop.f32.mrf.mxu1 }
 0x6fc   :  { %v1642_v31 = vmul.f32 %v2298_v7, %v1599_v30  ;;  %v2991_v10 = vsel %vm1648_vm0, %v1644_v5, -9e+15 }
 0x6fd   :  { %v2090_v34 = vpop.f32.mrf.mxu1 }
 0x6fe   :  { %v2986_v35 = vsel %vm1648_vm0, %v1642_v31, -9e+15  ;;  %v1645_v41 = vmul.f32 %v2304_v9, %v2090_v34 }
 0x6ff   :  { %1689 = vmax.xlane.f32.xlu0 %v2986_v35  ;;  %v1602_v42 = vpop.f32.mrf.mxu1 }
 0x700   :  { %v1643_v40 = vmul.f32 %v2302_v56, %v1602_v42  ;;  %v3001_v1 = vsel %vm1648_vm0, %v1645_v41, -9e+15 }
 0x702   :  { %v2995_v28 = vsel %vm1648_vm0, %v1643_v40, -9e+15 }
 0x703   :  { %1693 = vmax.xlane.f32.xlu0 %v2991_v10  ;;  %1691 = vmax.xlane.f32.xlu1 %v2995_v28 }
 0x707   :  { %1695 = vmax.xlane.f32.xlu1 %v3001_v1 }
 0x756   :  { %v1670_v11 = vpop.xlane.xlu0 %1669 }
 0x757   :  { %v3005_v46 = vsub.f32 %v2926_v45, %v1670_v11 }
 0x759   :  { %v1717_v27 = vmul.f32 1.442695, %v3005_v46 }
 0x75a   :  { %v1666_v6 = vpop.xlane.xlu0 %1665  ;;  %v1672_v52 = vpop.xlane.xlu1 %1671 }
 0x75b   :  { %2305 = vpow2.f32 %v1717_v27  ;;  %v3009_v63 = vsub.f32 %v2931_v54, %v1666_v6  ;;  %v3012_v25 = vsub.f32 %v2935_v53, %v1672_v52 }
 0x75d   :  { %v1713_v39 = vmul.f32 1.442695, %v3009_v63  ;;  %v1719_v58 = vmul.f32 1.442695, %v3012_v25 }
 0x75e   :  { %v1668_v38 = vpop.xlane.xlu1 %1667 }
 0x75f   :  { %2307 = vpow2.f32 %v1713_v39  ;;  %v3017_v45 = vsub.f32 %v2941_v62, %v1668_v38 }
 0x760   :  { %2309 = vpow2.f32 %v1719_v58 }
 0x761   :  { %v1715_v16 = vmul.f32 1.442695, %v3017_v45 }
 0x763   :  { %2311 = vpow2.f32 %v1715_v16 }
 0x766   :  { %v1678_v0 = vpop.xlane.xlu0 %1677 }
 0x767   :  { %v3021_v54 = vsub.f32 %v2946_v37, %v1678_v0 }
 0x768   :  { %v2306_v2 = vpop.eup %2305 }
 0x769   :  { %v1725_v53 = vmul.f32 1.442695, %v3021_v54  ;;  %1749 = vadd.xlane.f32.xlu0 %v2306_v2 }
 0x76a   :  { %v1674_v51 = vpop.xlane.xlu0 %1673  ;;  %v1680_v60 = vpop.xlane.xlu1 %1679 }
 0x76b   :  { %2313 = vpow2.f32 %v1725_v53  ;;  %v3025_v22 = vsub.f32 %v2951_v14, %v1674_v51  ;;  %v3028_v62 = vsub.f32 %v2955_v3, %v1680_v60 }
 0x76c   :  { %v2308_v13 = vpop.eup %2307 }
 0x76d   :  { %v2310_v49 = vpop.eup %2309  ;;  %v1721_v17 = vmul.f32 1.442695, %v3025_v22  ;;  %v1727_v37 = vmul.f32 1.442695, %v3028_v62  ;;  %1745 = vadd.xlane.f32.xlu0 %v2308_v13 }
 0x76e   :  { %1751 = vadd.xlane.f32.xlu1 %v2310_v49  ;;  %v1676_v12 = vpop.xlane.xlu1 %1675 }
 0x76f   :  { %2315 = vpow2.f32 %v1721_v17  ;;  %v3033_v32 = vsub.f32 %v2961_v57, %v1676_v12 }
 0x770   :  { %v2312_v48 = vpop.eup %2311  ;;  %2317 = vpow2.f32 %v1727_v37 }
 0x771   :  { %v1723_v14 = vmul.f32 1.442695, %v3033_v32 }
 0x772   :  { %1747 = vadd.xlane.f32.xlu1 %v2312_v48 }
 0x773   :  { %2319 = vpow2.f32 %v1723_v14 }
 0x776   :  { %v1686_v3 = vpop.xlane.xlu0 %1685 }
 0x777   :  { %v3037_v20 = vsub.f32 %v2966_v23, %v1686_v3 }
 0x778   :  { %v2314_v61 = vpop.eup %2313 }
 0x779   :  { %v1733_v21 = vmul.f32 1.442695, %v3037_v20  ;;  %1757 = vadd.xlane.f32.xlu0 %v2314_v61 }
 0x77a   :  { %v1682_v19 = vpop.xlane.xlu0 %1681  ;;  %v1688_v26 = vpop.xlane.xlu1 %1687 }
 0x77b   :  { %2321 = vpow2.f32 %v1733_v21  ;;  %v3041_v57 = vsub.f32 %v2971_v33, %v1682_v19  ;;  %v3044_v44 = vsub.f32 %v2975_v4, %v1688_v26 }
 0x77c   :  { %v2316_v15 = vpop.eup %2315 }
 0x77d   :  { %v2318_v36 = vpop.eup %2317  ;;  %v1729_v59 = vmul.f32 1.442695, %v3041_v57  ;;  %v1735_v23 = vmul.f32 1.442695, %v3044_v44  ;;  %1753 = vadd.xlane.f32.xlu0 %v2316_v15 }
 0x77e   :  { %1759 = vadd.xlane.f32.xlu1 %v2318_v36  ;;  %v1684_v8 = vpop.xlane.xlu1 %1683 }
 0x77f   :  { %2323 = vpow2.f32 %v1729_v59  ;;  %v3049_v29 = vsub.f32 %v2981_v50, %v1684_v8 }
 0x780   :  { %v2320_v55 = vpop.eup %2319  ;;  %2325 = vpow2.f32 %v1735_v23 }
 0x781   :  { %v1731_v24 = vmul.f32 1.442695, %v3049_v29 }
 0x782   :  { %1755 = vadd.xlane.f32.xlu1 %v2320_v55 }
 0x783   :  { %2327 = vpow2.f32 %v1731_v24 }
 0x788   :  { %v2322_v33 = vpop.eup %2321  ;;  %v1690_v4 = vpop.xlane.xlu0 %1689 }
 0x789   :  { %v3053_v47 = vsub.f32 %v2986_v35, %v1690_v4  ;;  %1765 = vadd.xlane.f32.xlu0 %v2322_v33 }
 0x78b   :  { %v1737_v43 = vmul.f32 1.442695, %v3053_v47 }
 0x78c   :  { %v2324_v7 = vpop.eup %2323  ;;  %v1694_v30 = vpop.xlane.xlu0 %1693 }
 0x78d   :  { %v1692_v31 = vpop.xlane.xlu1 %1691  ;;  %v2326_v18 = vpop.eup %2325  ;;  %2329 = vpow2.f32 %v1737_v43  ;;  %v3057_v50 = vsub.f32 %v2991_v10, %v1694_v30  ;;  %1761 = vadd.xlane.f32.xlu0 %v2324_v7 }
 0x78e   :  { %v3060_v34 = vsub.f32 %v2995_v28, %v1692_v31  ;;  %1767 = vadd.xlane.f32.xlu1 %v2326_v18 }
 0x78f   :  { %v1741_v5 = vmul.f32 1.442695, %v3057_v50 }
 0x790   :  { %v1739_v35 = vmul.f32 1.442695, %v3060_v34  ;;  %v2328_v56 = vpop.eup %2327 }
 0x791   :  { %v1696_v42 = vpop.xlane.xlu1 %1695  ;;  %2331 = vpow2.f32 %v1741_v5 }
 0x792   :  { %v3065_v40 = vsub.f32 %v3001_v1, %v1696_v42  ;;  %2333 = vpow2.f32 %v1739_v35  ;;  %1763 = vadd.xlane.f32.xlu1 %v2328_v56 }
 0x794   :  { %v1743_v9 = vmul.f32 1.442695, %v3065_v40 }
 0x796   :  { %2335 = vpow2.f32 %v1743_v9 }
 0x79a   :  { %v2330_v41 = vpop.eup %2329 }
 0x79b   :  { %1769 = vadd.xlane.f32.xlu0 %v2330_v41 }
 0x79e   :  { %v2332_v10 = vpop.eup %2331 }
 0x79f   :  { %v2334_v28 = vpop.eup %2333  ;;  %1773 = vadd.xlane.f32.xlu0 %v2332_v10 }
 0x7a0   :  { %1771 = vadd.xlane.f32.xlu1 %v2334_v28 }
 0x7a3   :  { %v2336_v11 = vpop.eup %2335 }
 0x7a4   :  { %1775 = vadd.xlane.f32.xlu1 %v2336_v11 }
 0x7f2   :  { %v1750_v27 = vpop.xlane.xlu0 %1749 }
 0x7f3   :  { %2337 = vlog2.f32 %v1750_v27 }
 0x7f6   :  { %v1746_v6 = vpop.xlane.xlu0 %1745 }
 0x7f7   :  { %2339 = vlog2.f32 %v1746_v6  ;;  %v1752_v52 = vpop.xlane.xlu1 %1751 }
 0x7f8   :  { %2341 = vlog2.f32 %v1752_v52 }
 0x7fb   :  { %v1748_v1 = vpop.xlane.xlu1 %1747 }
 0x7fc   :  { %2343 = vlog2.f32 %v1748_v1 }
 0x800   :  { %v2338_v39 = vpop.eup %2337 }
 0x801   :  { %v1782_v58 = vmul.f32 0.6931472, %v2338_v39 }
 0x802   :  { %v1758_v38 = vpop.xlane.xlu0 %1757 }
 0x803   :  { %v1811_v16 = vsub.f32 %v3005_v46, %v1782_v58  ;;  %2345 = vlog2.f32 %v1758_v38 }
 0x804   :  { %v2340_v0 = vpop.eup %2339 }
 0x805   :  { %v2342_v2 = vpop.eup %2341  ;;  %1827 = vst [vmem:[#allocation10 + $0x10] sm:$0xff] %v1811_v16  ;;  %v1778_v53 = vmul.f32 0.6931472, %v2340_v0 }
 0x806   :  { %v1784_v51 = vmul.f32 0.6931472, %v2342_v2  ;;  %v1754_v60 = vpop.xlane.xlu0 %1753 }
 0x807   :  { %v1809_v13 = vsub.f32 %v3009_v63, %v1778_v53  ;;  %2347 = vlog2.f32 %v1754_v60  ;;  %v1760_v49 = vpop.xlane.xlu1 %1759 }
 0x808   :  { %v1812_v17 = vsub.f32 %v3012_v25, %v1784_v51  ;;  %2349 = vlog2.f32 %v1760_v49 }
 0x809   :  { %v2344_v37 = vpop.eup %2343  ;;  %1825 = vst [vmem:[#allocation10] sm:$0xff] %v1809_v13 }
 0x80a   :  { %1828 = vst [vmem:[#allocation10 + $0x18] sm:$0xff] %v1812_v17  ;;  %v1780_v12 = vmul.f32 0.6931472, %v2344_v37 }
 0x80b   :  { %v1756_v48 = vpop.xlane.xlu1 %1755 }
 0x80c   :  { %v1810_v46 = vsub.f32 %v3017_v45, %v1780_v12  ;;  %2351 = vlog2.f32 %v1756_v48 }
 0x80e   :  { %1826 = vst [vmem:[#allocation10 + $0x8] sm:$0xff] %v1810_v46 }
 0x810   :  { %v2346_v14 = vpop.eup %2345 }
 0x811   :  { %v1790_v3 = vmul.f32 0.6931472, %v2346_v14 }
 0x812   :  { %v1766_v61 = vpop.xlane.xlu0 %1765 }
 0x813   :  { %v1815_v21 = vsub.f32 %v3021_v54, %v1790_v3  ;;  %2353 = vlog2.f32 %v1766_v61 }
 0x814   :  { %v2348_v63 = vpop.eup %2347 }
 0x815   :  { %v2350_v19 = vpop.eup %2349  ;;  %1831 = vst [vmem:[#allocation10 + $0x30] sm:$0xff] %v1815_v21  ;;  %v1786_v25 = vmul.f32 0.6931472, %v2348_v63 }
 0x816   :  { %v1792_v26 = vmul.f32 0.6931472, %v2350_v19  ;;  %v1762_v15 = vpop.xlane.xlu0 %1761 }
 0x817   :  { %v1813_v36 = vsub.f32 %v3025_v22, %v1786_v25  ;;  %2355 = vlog2.f32 %v1762_v15  ;;  %v1768_v59 = vpop.xlane.xlu1 %1767 }
 0x818   :  { %v1816_v45 = vsub.f32 %v3028_v62, %v1792_v26  ;;  %2357 = vlog2.f32 %v1768_v59 }
 0x819   :  { %v2352_v23 = vpop.eup %2351  ;;  %1829 = vst [vmem:[#allocation10 + $0x20] sm:$0xff] %v1813_v36 }
 0x81a   :  { %1832 = vst [vmem:[#allocation10 + $0x38] sm:$0xff] %v1816_v45  ;;  %v1788_v8 = vmul.f32 0.6931472, %v2352_v23 }
 0x81b   :  { %v1764_v55 = vpop.xlane.xlu1 %1763 }
 0x81c   :  { %v1814_v54 = vsub.f32 %v3033_v32, %v1788_v8  ;;  %2359 = vlog2.f32 %v1764_v55 }
 0x81e   :  { %1830 = vst [vmem:[#allocation10 + $0x28] sm:$0xff] %v1814_v54 }
 0x820   :  { %v2354_v24 = vpop.eup %2353 }
 0x821   :  { %v1798_v33 = vmul.f32 0.6931472, %v2354_v24 }
 0x823   :  { %v1819_v4 = vsub.f32 %v3037_v20, %v1798_v33 }
 0x824   :  { %v2356_v43 = vpop.eup %2355  ;;  %v1770_v22 = vpop.xlane.xlu0 %1769 }
 0x825   :  { %v2358_v7 = vpop.eup %2357  ;;  %1835 = vst [vmem:[#allocation10 + $0x50] sm:$0xff] %v1819_v4  ;;  %v1794_v30 = vmul.f32 0.6931472, %v2356_v43  ;;  %2361 = vlog2.f32 %v1770_v22 }
 0x826   :  { %v1800_v62 = vmul.f32 0.6931472, %v2358_v7 }
 0x827   :  { %v1817_v31 = vsub.f32 %v3041_v57, %v1794_v30 }
 0x828   :  { %v1820_v18 = vsub.f32 %v3044_v44, %v1800_v62  ;;  %v1774_v5 = vpop.xlane.xlu0 %1773 }
 0x829   :  { %v2360_v35 = vpop.eup %2359  ;;  %1833 = vst [vmem:[#allocation10 + $0x40] sm:$0xff] %v1817_v31  ;;  %2363 = vlog2.f32 %v1774_v5  ;;  %v1772_v32 = vpop.xlane.xlu1 %1771 }
 0x82a   :  { %1836 = vst [vmem:[#allocation10 + $0x58] sm:$0xff] %v1820_v18  ;;  %v1796_v56 = vmul.f32 0.6931472, %v2360_v35  ;;  %2365 = vlog2.f32 %v1772_v32 }
 0x82c   :  { %v1818_v20 = vsub.f32 %v3049_v29, %v1796_v56 }
 0x82d   :  { %v1776_v42 = vpop.xlane.xlu1 %1775 }
 0x82e   :  { %1834 = vst [vmem:[#allocation10 + $0x48] sm:$0xff] %v1818_v20  ;;  %2367 = vlog2.f32 %v1776_v42 }
 0x832   :  { %v2362_v9 = vpop.eup %2361 }
 0x833   :  { %v1802_v41 = vmul.f32 0.6931472, %v2362_v9 }
 0x835   :  { %v1821_v10 = vsub.f32 %v3053_v47, %v1802_v41 }
 0x836   :  { %v2364_v57 = vpop.eup %2363 }
 0x837   :  { %v2366_v28 = vpop.eup %2365  ;;  %1837 = vst [vmem:[#allocation10 + $0x60] sm:$0xff] %v1821_v10  ;;  %v1806_v44 = vmul.f32 0.6931472, %v2364_v57 }
 0x838   :  { %v1804_v11 = vmul.f32 0.6931472, %v2366_v28 }
 0x839   :  { %v1823_v27 = vsub.f32 %v3057_v50, %v1806_v44 }
 0x83a   :  { %v1822_v6 = vsub.f32 %v3060_v34, %v1804_v11 }
 0x83b   :  { %v2368_v52 = vpop.eup %2367  ;;  %1839 = vst [vmem:[#allocation10 + $0x70] sm:$0xff] %v1823_v27 }
 0x83c   :  { %1838 = vst [vmem:[#allocation10 + $0x68] sm:$0xff] %v1822_v6  ;;  %v1808_v29 = vmul.f32 0.6931472, %v2368_v52 }
 0x83e   :  { %v1824_v1 = vsub.f32 %v3065_v40, %v1808_v29 }
 0x840   :  { %1840 = vst [vmem:[#allocation10 + $0x78] sm:$0xff] %v1824_v1 }
 0x841   :  { %2460 = shalt.err (!%p2457_p10)
}
 0x842   :  { %1852 = dma.vmem_to_hbm [thread:$0]  %s1847_s11, 2048, %s3094_s4, [#allocation4], %s2483_s0, %s2483_s0, %s2484_s8  }
 0x843   :  { %2475 = dma.done.wait [#allocation4], 2048  }
 0x844   :  { %2476 = vsyncadd [#allocation4], 4294965248 }
 0x845   :  { %1856 = vsyncpa [#allocation3], 1 }
 0x846   :  { %1857 = vsyncpa [#allocation6], 1 }
 0x847   :  { %1858 = vsyncpa [#allocation9], 1 }
 0x848   :  { %1859 = vsyncpa [#allocation4], 1 }

</bundles_post_ra>
